<compile_context>
chip_gen: v7x
topology: tpu7x:2x2x1
jax: 0.10.0
libtpu: 0.0.40
codegen_flags: <defaults>
</compile_context>

<pallas_src>
import jax
import jax.numpy as jnp
from jax import lax
from jax.experimental import pallas as pl
from jax.experimental.pallas import tpu as pltpu

EPS = 1e-5


# ---------------------------------------------------------------------------
# Fused Bottleneck kernel (one grid step = TB images)
# ---------------------------------------------------------------------------
def _bottleneck_kernel(x_ref, w1_ref, b1_ref, w2_ref, b2_ref, w3_ref, b3_ref,
                       o_ref, im2_ref):
    TB, H, W, Cin = x_ref.shape
    Cmid = w1_ref.shape[1]
    M = TB * H * W

    # ---- conv1 (1x1) + bn1 + relu  (bn1 scale pre-folded into w1) ----------
    x_bf = x_ref[...]                                        # (TB,H,W,Cin) bf16
    h1 = jnp.dot(x_bf.reshape(M, Cin), w1_ref[...],
                 preferred_element_type=jnp.float32)         # (M, Cmid) f32
    h1 = jnp.maximum(h1 + b1_ref[...], 0.0)
    h1 = h1.astype(jnp.bfloat16).reshape(TB, H, W, Cmid)     # bf16 from here on

    # ---- conv2 (3x3, stride=1, pad=1) + bn2 + relu --------------------------
    # Horizontal (kw) taps are packed into the lane dim (im2col, K = 3*Cmid);
    # vertical (kh) taps become cheap leading-dim slices of the VMEM scratch
    # -> 3 MXU matmuls total.  Everything is bf16 (half the copy bytes).
    zc = jnp.zeros((TB, H, 1, Cmid), jnp.bfloat16)
    h1w = jnp.concatenate([zc, h1, zc], axis=2)              # (TB,H,W+2,Cmid)
    h1cat = jnp.concatenate(
        [h1w[:, :, 0:W, :], h1w[:, :, 1:W + 1, :], h1w[:, :, 2:W + 2, :]],
        axis=3)                                              # (TB,H,W,3*Cmid)

    # Write interior once; zero only the two halo rows (no H-pad concatenate).
    zrow = jnp.zeros((TB, 1, W, 3 * Cmid), jnp.bfloat16)
    im2_ref[:, 0:1, :, :] = zrow
    im2_ref[:, H + 1:H + 2, :, :] = zrow
    im2_ref[:, 1:H + 1, :, :] = h1cat

    acc2 = jnp.dot(im2_ref[:, 0:H, :, :].reshape(M, 3 * Cmid), w2_ref[0],
                   preferred_element_type=jnp.float32)
    for kh in (1, 2):                                        # static unroll
        lhs = im2_ref[:, kh:kh + H, :, :].reshape(M, 3 * Cmid)
        acc2 = acc2 + jnp.dot(lhs, w2_ref[kh],
                              preferred_element_type=jnp.float32)
    h2 = jnp.maximum(acc2 + b2_ref[...], 0.0).astype(jnp.bfloat16)  # (M,Cmid)

    # ---- conv3 (1x1) + bn3 + residual add + relu ----------------------------
    acc3 = jnp.dot(h2, w3_ref[...], preferred_element_type=jnp.float32)
    res = x_ref[...].reshape(M, Cin).astype(jnp.float32)     # residual (late read)
    o_ref[...] = jnp.maximum(acc3 + b3_ref[...] + res, 0.0)  # (M, Cexp) f32


# ---------------------------------------------------------------------------
# Wrapper helpers
# ---------------------------------------------------------------------------
def _fold_bn(gamma, beta, mean, var):
    scale = gamma / jnp.sqrt(var + EPS)
    bias = beta - mean * scale
    return scale.astype(jnp.float32), bias.astype(jnp.float32)


def _vmem_limit_bytes():
    """Generation-aware VMEM request with headroom (v7x only has 64 MiB/TC)."""
    default = 64 * 1024 * 1024
    try:
        info = pltpu.get_tpu_info()
        cap = getattr(info, "vmem_capacity_bytes", None)
        if not cap:
            return default
        return max(16 * 1024 * 1024, int(cap) * 3 // 4)
    except Exception:
        return default


def _pick_batch_tile(n, h, w, cin, cmid, cexp, budget_bytes, min_steps=4):
    """Largest divisor of n fitting the VMEM budget, keeping >= min_steps grid
    steps (so both v7x TensorCores get pipelined work)."""
    per_img = (
        2 * h * w * cin * 2            # input block, bf16, double-buffered
        + 2 * h * w * cexp * 4         # output block, f32, double-buffered
        + (h + 2) * w * 3 * cmid * 2   # im2col VMEM scratch, bf16
        + h * (w + 2) * cmid * 2       # padded-W temporary, bf16
        + h * w * 3 * cmid * 2         # channel-concat temporary, bf16
        + h * w * cmid * 10            # h1 bf16 + conv2 acc / h2 f32
        + h * w * cexp * 8             # conv3 acc + epilogue f32
        + h * w * cin * 4              # residual up-cast f32
    )
    tb = max(1, min(n, int(budget_bytes // max(per_img, 1))))
    if n >= min_steps:
        tb = min(tb, max(1, n // min_steps))
    while n % tb:
        tb -= 1
    return tb


# ---------------------------------------------------------------------------
# Public forward
# ---------------------------------------------------------------------------
def bottleneck_forward(x_in, p, *, block_batch=None, layout="NCHW"):
    if layout == "NCHW":
        x = jnp.transpose(x_in, (0, 2, 3, 1))      # NCHW -> NHWC (see TODO below)
    else:
        x = x_in
    # TODO(synk): keep the whole network NHWC to drop these boundary
    #             transposes (each one round-trips the activation via HBM).
    x = x.astype(jnp.bfloat16)                     # halve the input DMA
    N, H, W, Cin = x.shape
    Cmid = p["w1"].shape[1]
    Cexp = p["w3"].shape[1]
    assert Cexp == Cin, "downsample=None requires in_planes == 4 * out_planes"

    s1, b1 = _fold_bn(p["g1"], p["be1"], p["m1"], p["v1"])
    s2, b2 = _fold_bn(p["g2"], p["be2"], p["m2"], p["v2"])
    s3, b3 = _fold_bn(p["g3"], p["be3"], p["m3"], p["v3"])

    # Fold BN scales into the conv weights; cast matmul weights to bf16.
    w1b = (p["w1"] * s1).astype(jnp.bfloat16)                     # (Cin, Cmid)
    # HWIO (3,3,Cmid,Cmid) scaled on Cout, regrouped to (kh, kw*Cmid+cin, cout)
    # to match the in-kernel kw-im2col lane ordering.
    w2b = (p["w2"] * s2).reshape(3, 3 * Cmid, Cmid).astype(jnp.bfloat16)
    w3b = (p["w3"] * s3).astype(jnp.bfloat16)                     # (Cmid, Cexp)
    b1r = b1.reshape(1, Cmid)
    b2r = b2.reshape(1, Cmid)
    b3r = b3.reshape(1, Cexp)

    vmem_limit = _vmem_limit_bytes()
    if block_batch is None:
        TB = _pick_batch_tile(N, H, W, Cin, Cmid, Cexp, vmem_limit // 2)
    else:
        TB = block_batch
    assert N % TB == 0, "batch tile must divide the batch"
    Mb = TB * H * W

    out2d = pl.pallas_call(
        _bottleneck_kernel,
        out_shape=jax.ShapeDtypeStruct((N * H * W, Cexp), jnp.float32),
        grid_spec=pltpu.PrefetchScalarGridSpec(
            num_scalar_prefetch=0,
            grid=(N // TB,),
            in_specs=[
                pl.BlockSpec((TB, H, W, Cin), lambda b: (b, 0, 0, 0)),
                pl.BlockSpec((Cin, Cmid), lambda b: (0, 0)),
                pl.BlockSpec((1, Cmid), lambda b: (0, 0)),
                pl.BlockSpec((3, 3 * Cmid, Cmid), lambda b: (0, 0, 0)),
                pl.BlockSpec((1, Cmid), lambda b: (0, 0)),
                pl.BlockSpec((Cmid, Cexp), lambda b: (0, 0)),
                pl.BlockSpec((1, Cexp), lambda b: (0, 0)),
            ],
            out_specs=pl.BlockSpec((Mb, Cexp), lambda b: (b, 0)),
            scratch_shapes=[
                pltpu.VMEM((TB, H + 2, W, 3 * Cmid), jnp.bfloat16),  # im2col
            ],
        ),
        compiler_params=pltpu.CompilerParams(
            dimension_semantics=("parallel",),     # megacore sharding on v7x
            vmem_limit_bytes=vmem_limit,
        ),
    )(x, w1b, b1r, w2b, b2r, w3b, b3r)

    out = out2d.reshape(N, H, W, Cexp)
    if layout == "NCHW":
        out = jnp.transpose(out, (0, 3, 1, 2))     # NHWC -> NCHW
    return out


# ---------------------------------------------------------------------------
# Pure-JAX (f32) reference for verification
# ---------------------------------------------------------------------------
def reference_forward(x_nchw, p):
    x = jnp.transpose(x_nchw, (0, 2, 3, 1)).astype(jnp.float32)

    def bn(y, g, be, m, v):
        return (y - m) / jnp.sqrt(v + EPS) * g + be

    out = jnp.einsum("nhwc,co->nhwo", x, p["w1"])
    out = jax.nn.relu(bn(out, p["g1"], p["be1"], p["m1"], p["v1"]))
    out = lax.conv_general_dilated(out, p["w2"], (1, 1), "SAME",
                                   dimension_numbers=("NHWC", "HWIO", "NHWC"))
    out = jax.nn.relu(bn(out, p["g2"], p["be2"], p["m2"], p["v2"]))
    out = jnp.einsum("nhwc,co->nhwo", out, p["w3"])
    out = bn(out, p["g3"], p["be3"], p["m3"], p["v3"])
    out = jax.nn.relu(out + x)
    return jnp.transpose(out, (0, 3, 1, 2))


# ---------------------------------------------------------------------------
if __name__ == "__main__":
    # Bottleneck(in_planes=64, out_planes=16, stride=1, downsample=None):
    # x in NCHW = (4, 64, 16, 16).  expansion=4 => in_planes == 4*out_planes.
    N, out_planes, H, W = 4, 16, 16, 16
    in_planes = out_planes * 4

    key = jax.random.PRNGKey(0)
    ks = jax.random.split(key, 16)
    f32 = jnp.float32

    params = {
        # conv weights: HWIO for 3x3, (Cin, Cout) for 1x1 (torch OIHW transposed)
        "w1": jax.random.normal(ks[0], (in_planes, out_planes), f32) * 0.1,
        "w2": jax.random.normal(ks[1], (3, 3, out_planes, out_planes), f32) * 0.1,
        "w3": jax.random.normal(ks[2], (out_planes, in_planes), f32) * 0.1,
        # bn1
        "g1": jax.random.uniform(ks[3], (out_planes,), f32, 0.5, 1.5),
        "be1": jax.random.normal(ks[4], (out_planes,), f32) * 0.1,
        "m1": jax.random.normal(ks[5], (out_planes,), f32) * 0.1,
        "v1": jax.random.uniform(ks[6], (out_planes,), f32, 0.5, 1.5),
        # bn2
        "g2": jax.random.uniform(ks[7], (out_planes,), f32, 0.5, 1.5),
        "be2": jax.random.normal(ks[8], (out_planes,), f32) * 0.1,
        "m2": jax.random.normal(ks[9], (out_planes,), f32) * 0.1,
        "v2": jax.random.uniform(ks[10], (out_planes,), f32, 0.5, 1.5),
        # bn3
        "g3": jax.random.uniform(ks[11], (in_planes,), f32, 0.5, 1.5),
        "be3": jax.random.normal(ks[12], (in_planes,), f32) * 0.1,
        "m3": jax.random.normal(ks[13], (in_planes,), f32) * 0.1,
        "v3": jax.random.uniform(ks[14], (in_planes,), f32, 0.5, 1.5),
    }

    x = jax.random.normal(ks[15], (N, in_planes, H, W), f32)

    fwd = jax.jit(lambda xx, pp: bottleneck_forward(xx, pp))
    out = jax.block_until_ready(fwd(x, params))
    ref = jax.block_until_ready(reference_forward(x, params))

    assert out.shape == (N, in_planes, H, W)
    # bf16 input + bf16 matmuls (f32 accumulation) vs. f32 reference.
    assert jnp.allclose(out, ref, atol=5e-2, rtol=5e-2), "mismatch vs JAX reference"
    print("KERNEL_OK")
</pallas_src>

<mosaic_0001>
module attributes {stable_mosaic.version = 11 : i64} {
  func.func @_bottleneck_kernel(%arg0: i32, %arg1: memref<1x16x16x64xbf16, #tpu.memory_space<vmem>>, %arg2: memref<64x16xbf16, #tpu.memory_space<vmem>>, %arg3: memref<1x16xf32, #tpu.memory_space<vmem>>, %arg4: memref<3x48x16xbf16, #tpu.memory_space<vmem>>, %arg5: memref<1x16xf32, #tpu.memory_space<vmem>>, %arg6: memref<16x64xbf16, #tpu.memory_space<vmem>>, %arg7: memref<1x64xf32, #tpu.memory_space<vmem>>, %arg8: memref<256x64xf32, #tpu.memory_space<vmem>>, %arg9: memref<1x18x16x48xbf16, #tpu.memory_space<vmem>>) attributes {dimension_semantics = [#tpu.dimension_semantics<parallel>], iteration_bounds = array<i64: 4>, scalar_prefetch = 0 : i64, scratch_operands = 1 : i64, tpu.core_type = #tpu.core_type<tc>, window_params = [{transform_indices = @transform_0, window_bounds = array<i64: 1, 16, 16, 64>}, {pipeline_mode = #tpu.pipeline_mode<synchronous>, transform_indices = @transform_1, window_bounds = array<i64: 64, 16>}, {pipeline_mode = #tpu.pipeline_mode<synchronous>, transform_indices = @transform_2, window_bounds = array<i64: 1, 16>}, {pipeline_mode = #tpu.pipeline_mode<synchronous>, transform_indices = @transform_3, window_bounds = array<i64: 3, 48, 16>}, {pipeline_mode = #tpu.pipeline_mode<synchronous>, transform_indices = @transform_4, window_bounds = array<i64: 1, 16>}, {pipeline_mode = #tpu.pipeline_mode<synchronous>, transform_indices = @transform_5, window_bounds = array<i64: 16, 64>}, {pipeline_mode = #tpu.pipeline_mode<synchronous>, transform_indices = @transform_6, window_bounds = array<i64: 1, 64>}, {transform_indices = @transform_7, window_bounds = array<i64: 256, 64>}]} {
    %c0 = arith.constant 0 : index
    %c0_0 = arith.constant 0 : index
    %c0_1 = arith.constant 0 : index
    %c0_2 = arith.constant 0 : index
    %0 = vector.load %arg1[%c0, %c0_0, %c0_1, %c0_2] : memref<1x16x16x64xbf16, #tpu.memory_space<vmem>>, vector<1x16x16x64xbf16>
    %1 = vector.shape_cast %0 : vector<1x16x16x64xbf16> to vector<256x64xbf16>
    %c0_3 = arith.constant 0 : index
    %c0_4 = arith.constant 0 : index
    %2 = vector.load %arg2[%c0_3, %c0_4] : memref<64x16xbf16, #tpu.memory_space<vmem>>, vector<64x16xbf16>
    %cst = arith.constant dense<0.000000e+00> : vector<256x16xf32>
    %3 = tpu.matmul %1, %2, %cst {dimension_numbers = #tpu.dot_dimension_numbers<[1], [0], [0], [1], [0, 0, 1, 1], [], []>} : vector<256x64xbf16>, vector<64x16xbf16>, vector<256x16xf32> -> vector<256x16xf32>
    %c0_5 = arith.constant 0 : index
    %c0_6 = arith.constant 0 : index
    %4 = vector.load %arg3[%c0_5, %c0_6] : memref<1x16xf32, #tpu.memory_space<vmem>>, vector<1x16xf32>
    %5 = vector.broadcast %4 : vector<1x16xf32> to vector<256x16xf32>
    %6 = arith.addf %3, %5 : vector<256x16xf32>
    %cst_7 = arith.constant 0.000000e+00 : f32
    %7 = vector.broadcast %cst_7 : f32 to vector<256x16xf32>
    %8 = arith.maximumf %6, %7 : vector<256x16xf32>
    %9 = arith.truncf %8 : vector<256x16xf32> to vector<256x16xbf16>
    %10 = vector.shape_cast %9 : vector<256x16xbf16> to vector<1x16x16x16xbf16>
    %cst_8 = arith.constant 0.000000e+00 : bf16
    %11 = vector.broadcast %cst_8 : bf16 to vector<1x16x1x16xbf16>
    %12 = tpu.concatenate %11, %10, %11 in 2 : vector<1x16x1x16xbf16>, vector<1x16x16x16xbf16>, vector<1x16x1x16xbf16> -> vector<1x16x18x16xbf16>
    %13 = vector.extract_strided_slice %12 {offsets = [0, 0, 0, 0], sizes = [1, 16, 16, 16], strides = [1, 1, 1, 1]} : vector<1x16x18x16xbf16> to vector<1x16x16x16xbf16>
    %14 = vector.extract_strided_slice %12 {offsets = [0, 0, 1, 0], sizes = [1, 16, 16, 16], strides = [1, 1, 1, 1]} : vector<1x16x18x16xbf16> to vector<1x16x16x16xbf16>
    %15 = vector.extract_strided_slice %12 {offsets = [0, 0, 2, 0], sizes = [1, 16, 16, 16], strides = [1, 1, 1, 1]} : vector<1x16x18x16xbf16> to vector<1x16x16x16xbf16>
    %16 = tpu.concatenate %13, %14, %15 in 3 : vector<1x16x16x16xbf16>, vector<1x16x16x16xbf16>, vector<1x16x16x16xbf16> -> vector<1x16x16x48xbf16>
    %cst_9 = arith.constant 0.000000e+00 : bf16
    %17 = vector.broadcast %cst_9 : bf16 to vector<1x1x16x48xbf16>
    %c0_10 = arith.constant 0 : index
    %c0_11 = arith.constant 0 : index
    %c0_12 = arith.constant 0 : index
    %c0_13 = arith.constant 0 : index
    %18 = vector.load %arg9[%c0_10, %c0_11, %c0_12, %c0_13] : memref<1x18x16x48xbf16, #tpu.memory_space<vmem>>, vector<1x1x16x48xbf16>
    tpu.vector_store %arg9[%c0_10, %c0_11, %c0_12, %c0_13], %17 {strides = array<i32>} : memref<1x18x16x48xbf16, #tpu.memory_space<vmem>>, vector<1x1x16x48xbf16>,
    %c0_14 = arith.constant 0 : index
    %c17 = arith.constant 17 : index
    %c0_15 = arith.constant 0 : index
    %c0_16 = arith.constant 0 : index
    %19 = vector.load %arg9[%c0_14, %c17, %c0_15, %c0_16] : memref<1x18x16x48xbf16, #tpu.memory_space<vmem>>, vector<1x1x16x48xbf16>
    tpu.vector_store %arg9[%c0_14, %c17, %c0_15, %c0_16], %17 {strides = array<i32>} : memref<1x18x16x48xbf16, #tpu.memory_space<vmem>>, vector<1x1x16x48xbf16>,
    %c0_17 = arith.constant 0 : index
    %c1 = arith.constant 1 : index
    %c0_18 = arith.constant 0 : index
    %c0_19 = arith.constant 0 : index
    %20 = vector.load %arg9[%c0_17, %c1, %c0_18, %c0_19] : memref<1x18x16x48xbf16, #tpu.memory_space<vmem>>, vector<1x16x16x48xbf16>
    tpu.vector_store %arg9[%c0_17, %c1, %c0_18, %c0_19], %16 {strides = array<i32>} : memref<1x18x16x48xbf16, #tpu.memory_space<vmem>>, vector<1x16x16x48xbf16>,
    %c0_20 = arith.constant 0 : index
    %c0_21 = arith.constant 0 : index
    %c0_22 = arith.constant 0 : index
    %c0_23 = arith.constant 0 : index
    %21 = vector.load %arg9[%c0_20, %c0_21, %c0_22, %c0_23] : memref<1x18x16x48xbf16, #tpu.memory_space<vmem>>, vector<1x16x16x48xbf16>
    %22 = vector.shape_cast %21 : vector<1x16x16x48xbf16> to vector<256x48xbf16>
    %c0_24 = arith.constant 0 : index
    %c0_25 = arith.constant 0 : index
    %c0_26 = arith.constant 0 : index
    %23 = vector.load %arg4[%c0_24, %c0_25, %c0_26] : memref<3x48x16xbf16, #tpu.memory_space<vmem>>, vector<1x48x16xbf16>
    %24 = vector.shape_cast %23 : vector<1x48x16xbf16> to vector<48x16xbf16>
    %cst_27 = arith.constant dense<0.000000e+00> : vector<256x16xf32>
    %25 = tpu.matmul %22, %24, %cst_27 {dimension_numbers = #tpu.dot_dimension_numbers<[1], [0], [0], [1], [0, 0, 1, 1], [], []>} : vector<256x48xbf16>, vector<48x16xbf16>, vector<256x16xf32> -> vector<256x16xf32>
    %c0_28 = arith.constant 0 : index
    %c1_29 = arith.constant 1 : index
    %c0_30 = arith.constant 0 : index
    %c0_31 = arith.constant 0 : index
    %26 = vector.load %arg9[%c0_28, %c1_29, %c0_30, %c0_31] : memref<1x18x16x48xbf16, #tpu.memory_space<vmem>>, vector<1x16x16x48xbf16>
    %27 = vector.shape_cast %26 : vector<1x16x16x48xbf16> to vector<256x48xbf16>
    %c1_32 = arith.constant 1 : index
    %c0_33 = arith.constant 0 : index
    %c0_34 = arith.constant 0 : index
    %28 = vector.load %arg4[%c1_32, %c0_33, %c0_34] : memref<3x48x16xbf16, #tpu.memory_space<vmem>>, vector<1x48x16xbf16>
    %29 = vector.shape_cast %28 : vector<1x48x16xbf16> to vector<48x16xbf16>
    %cst_35 = arith.constant dense<0.000000e+00> : vector<256x16xf32>
    %30 = tpu.matmul %27, %29, %cst_35 {dimension_numbers = #tpu.dot_dimension_numbers<[1], [0], [0], [1], [0, 0, 1, 1], [], []>} : vector<256x48xbf16>, vector<48x16xbf16>, vector<256x16xf32> -> vector<256x16xf32>
    %31 = arith.addf %25, %30 : vector<256x16xf32>
    %c0_36 = arith.constant 0 : index
    %c2 = arith.constant 2 : index
    %c0_37 = arith.constant 0 : index
    %c0_38 = arith.constant 0 : index
    %32 = vector.load %arg9[%c0_36, %c2, %c0_37, %c0_38] : memref<1x18x16x48xbf16, #tpu.memory_space<vmem>>, vector<1x16x16x48xbf16>
    %33 = vector.shape_cast %32 : vector<1x16x16x48xbf16> to vector<256x48xbf16>
    %c2_39 = arith.constant 2 : index
    %c0_40 = arith.constant 0 : index
    %c0_41 = arith.constant 0 : index
    %34 = vector.load %arg4[%c2_39, %c0_40, %c0_41] : memref<3x48x16xbf16, #tpu.memory_space<vmem>>, vector<1x48x16xbf16>
    %35 = vector.shape_cast %34 : vector<1x48x16xbf16> to vector<48x16xbf16>
    %cst_42 = arith.constant dense<0.000000e+00> : vector<256x16xf32>
    %36 = tpu.matmul %33, %35, %cst_42 {dimension_numbers = #tpu.dot_dimension_numbers<[1], [0], [0], [1], [0, 0, 1, 1], [], []>} : vector<256x48xbf16>, vector<48x16xbf16>, vector<256x16xf32> -> vector<256x16xf32>
    %37 = arith.addf %31, %36 : vector<256x16xf32>
    %c0_43 = arith.constant 0 : index
    %c0_44 = arith.constant 0 : index
    %38 = vector.load %arg5[%c0_43, %c0_44] : memref<1x16xf32, #tpu.memory_space<vmem>>, vector<1x16xf32>
    %39 = vector.broadcast %38 : vector<1x16xf32> to vector<256x16xf32>
    %40 = arith.addf %37, %39 : vector<256x16xf32>
    %cst_45 = arith.constant 0.000000e+00 : f32
    %41 = vector.broadcast %cst_45 : f32 to vector<256x16xf32>
    %42 = arith.maximumf %40, %41 : vector<256x16xf32>
    %43 = arith.truncf %42 : vector<256x16xf32> to vector<256x16xbf16>
    %c0_46 = arith.constant 0 : index
    %c0_47 = arith.constant 0 : index
    %44 = vector.load %arg6[%c0_46, %c0_47] : memref<16x64xbf16, #tpu.memory_space<vmem>>, vector<16x64xbf16>
    %cst_48 = arith.constant dense<0.000000e+00> : vector<256x64xf32>
    %45 = tpu.matmul %43, %44, %cst_48 {dimension_numbers = #tpu.dot_dimension_numbers<[1], [0], [0], [1], [0, 0, 1, 1], [], []>} : vector<256x16xbf16>, vector<16x64xbf16>, vector<256x64xf32> -> vector<256x64xf32>
    %c0_49 = arith.constant 0 : index
    %c0_50 = arith.constant 0 : index
    %c0_51 = arith.constant 0 : index
    %c0_52 = arith.constant 0 : index
    %46 = vector.load %arg1[%c0_49, %c0_50, %c0_51, %c0_52] : memref<1x16x16x64xbf16, #tpu.memory_space<vmem>>, vector<1x16x16x64xbf16>
    %47 = vector.shape_cast %46 : vector<1x16x16x64xbf16> to vector<256x64xbf16>
    %48 = arith.extf %47 : vector<256x64xbf16> to vector<256x64xf32>
    %c0_53 = arith.constant 0 : index
    %c0_54 = arith.constant 0 : index
    %49 = vector.load %arg7[%c0_53, %c0_54] : memref<1x64xf32, #tpu.memory_space<vmem>>, vector<1x64xf32>
    %50 = vector.broadcast %49 : vector<1x64xf32> to vector<256x64xf32>
    %51 = arith.addf %45, %50 : vector<256x64xf32>
    %52 = arith.addf %51, %48 : vector<256x64xf32>
    %cst_55 = arith.constant 0.000000e+00 : f32
    %53 = vector.broadcast %cst_55 : f32 to vector<256x64xf32>
    %54 = arith.maximumf %52, %53 : vector<256x64xf32>
    %c0_56 = arith.constant 0 : index
    %c0_57 = arith.constant 0 : index
    %55 = vector.load %arg8[%c0_56, %c0_57] : memref<256x64xf32, #tpu.memory_space<vmem>>, vector<256x64xf32>
    tpu.vector_store %arg8[%c0_56, %c0_57], %54 {strides = array<i32>} : memref<256x64xf32, #tpu.memory_space<vmem>>, vector<256x64xf32>,
    return
  }
  func.func @transform_0(%arg0: i32) -> (i32, i32, i32, i32) {
    %c0_i32 = arith.constant 0 : i32
    %c0_i32_0 = arith.constant 0 : i32
    %c0_i32_1 = arith.constant 0 : i32
    %c0_i32_2 = arith.constant 0 : i32
    return %arg0, %c0_i32, %c0_i32_0, %c0_i32_1 : i32, i32, i32, i32
  }
  func.func @transform_1(%arg0: i32) -> (i32, i32) {
    %c0_i32 = arith.constant 0 : i32
    %c0_i32_0 = arith.constant 0 : i32
    %c0_i32_1 = arith.constant 0 : i32
    return %c0_i32, %c0_i32_0 : i32, i32
  }
  func.func @transform_2(%arg0: i32) -> (i32, i32) {
    %c0_i32 = arith.constant 0 : i32
    %c0_i32_0 = arith.constant 0 : i32
    %c0_i32_1 = arith.constant 0 : i32
    return %c0_i32, %c0_i32_0 : i32, i32
  }
  func.func @transform_3(%arg0: i32) -> (i32, i32, i32) {
    %c0_i32 = arith.constant 0 : i32
    %c0_i32_0 = arith.constant 0 : i32
    %c0_i32_1 = arith.constant 0 : i32
    %c0_i32_2 = arith.constant 0 : i32
    return %c0_i32, %c0_i32_0, %c0_i32_1 : i32, i32, i32
  }
  func.func @transform_4(%arg0: i32) -> (i32, i32) {
    %c0_i32 = arith.constant 0 : i32
    %c0_i32_0 = arith.constant 0 : i32
    %c0_i32_1 = arith.constant 0 : i32
    return %c0_i32, %c0_i32_0 : i32, i32
  }
  func.func @transform_5(%arg0: i32) -> (i32, i32) {
    %c0_i32 = arith.constant 0 : i32
    %c0_i32_0 = arith.constant 0 : i32
    %c0_i32_1 = arith.constant 0 : i32
    return %c0_i32, %c0_i32_0 : i32, i32
  }
  func.func @transform_6(%arg0: i32) -> (i32, i32) {
    %c0_i32 = arith.constant 0 : i32
    %c0_i32_0 = arith.constant 0 : i32
    %c0_i32_1 = arith.constant 0 : i32
    return %c0_i32, %c0_i32_0 : i32, i32
  }
  func.func @transform_7(%arg0: i32) -> (i32, i32) {
    %c0_i32 = arith.constant 0 : i32
    %c0_i32_0 = arith.constant 0 : i32
    return %arg0, %c0_i32 : i32, i32
  }
}

</mosaic_0001>

<bundles_post_ra>
// kernel: _lambda_.1
= control target key start
LH: loop header
LB: loop body
LE: loop exit
PB: predicated region body
PF: predicated region fallthrough
CT: control target
= control target key end

     0   :  { %12 = vsyncpa [#allocation4], 0  ;;  %s4880_s0 = inlined_call_operand.hbm [shape: bf16[4,16,16,64], index: 0, kind: input, shape index: {}]   ;;  %s4881_s1 = inlined_call_operand.hbm [shape: bf16[64,16], index: 1, kind: input, shape index: {}]   ;;  %s4882_s2 = inlined_call_operand.hbm [shape: f32[1,16], index: 2, kind: input, shape index: {}]   ;;  %s4883_s3 = inlined_call_operand.hbm [shape: bf16[3,48,16], index: 3, kind: input, shape index: {}]   ;;  %s4884_s4 = inlined_call_operand.hbm [shape: f32[1,16], index: 4, kind: input, shape index: {}]   ;;  %s4885_s5 = inlined_call_operand.hbm [shape: bf16[16,64], index: 5, kind: input, shape index: {}]   ;;  %s4886_s6 = inlined_call_operand.hbm [shape: f32[1,64], index: 6, kind: input, shape index: {}]   ;;  %s4887_s7 = inlined_call_operand.hbm [shape: f32[1024,64], index: 7, kind: output, shape index: {}]  }
   0x1   :  { %14 = vsyncpa [#allocation4 + $0x1], 0 }
   0x2   :  { %15 = vsyncpa [#allocation7], 0 }
   0x3   :  { %16 = vsyncpa [#allocation10], 0 }
   0x4   :  { %17 = vsyncpa [#allocation13], 0 }
   0x5   :  { %18 = vsyncpa [#allocation5], 0 }
   0x6   :  { %20 = vsyncpa [#allocation5 + $0x1], 0  ;;  %s3855_s24 = smov 0   ;;  %s3857_s25 = smov 0  }
   0x7   :  { %s3859_s26 = smov 0   ;;  %s3861_s27 = smov 0  }
   0x8 LB: > { %s3800_s28 = smov [#allocation6]   ;;  %s3876_s30 = sadd.s32 4294967295, %s3798_s27   ;;  %s3798_s27 = sphi %s3861_s27, %s4916_s27   ;;  %s3794_s26 = sphi %s3859_s26, %s4915_s26   ;;  %s3790_s25 = sphi %s3857_s25, %s4914_s25   ;;  %s3786_s24 = sphi %s3855_s24, %s4913_s24  }
   0x9   : > { %s221_s29 = sshll.u32 %s3800_s28, 4  ;;  %p2807_p0 = scmp.ge.s32.totalorder %s3798_s27, 1  ;;  %s3881_s29 = int_to_ptr.vmem [resolvable:$true] %s221_s29 }
   0xa   : > { %p4888_p1 = scmp.eq.s32.totalorder %s3876_s30, 0  ;;  %p209_p2 = scmp.lt.s32.totalorder %s3798_s27, 5 }
   0xb   : > { %s3801_s9 = smov [#allocation9]   ;;  %s3802_s12 = smov [#allocation12]  }
   0xc   : > { %p3883_p3 = pnand %p2807_p0, %p209_p2  ;;  %s245_s10 = sshll.u32 %s3801_s9, 4  ;;  %s3895_s10 = int_to_ptr.vmem [resolvable:$true] %s245_s10 }
   0xd   : > { %s269_s13 = sshll.u32 %s3802_s12, 4  ;;  %s3522_s16 = scalar_lea.hbm %s4881_s1, 512  ;;  %s3897_s13 = int_to_ptr.vmem [resolvable:$true] %s269_s13 }
   0xe   : > { %s4892_s8 = scalar_select %p3883_p3, 1, 0 }
   0xf   : > { %p3406_p4 = pneg %p3883_p3  ;;  %p3523_p6 = scmp.ne.s32.totalorder %s4881_s1, %s3522_s16 }
  0x10   : > { %p3529_p10 = scmp.lt.u32.totalorder %s3522_s16, %s4881_s1 }
  0x11   : > { %p3891_p5 = pnand %p3406_p4, %p4888_p1 }
  0x13   : > { %p3907_p7 = pneg %p3891_p5 }
  0x15   : > { %p3525_p8 = pnand %p3907_p7, %p3523_p6 }
  0x17   : > { %p3526_p9 = pneg %p3525_p8 }
  0x19   : > { %p3531_p11 = pnand %p3529_p10, %p3526_p9 }
  0x1b   : > { %3534 = shalt.err (!%p3531_p11)
}
  0x1c   : > { %s3535_s22 = scalar_lea.vmem %s3881_s29, 512  ;;  %p3543_p2 = scmp.lt.s32.totalorder %s3881_s29, %s3881_s29 }
  0x1d   : > { %p3536_p12 = scmp.ne.s32.totalorder %s3881_s29, %s3535_s22  ;;  %p3544_p4 = scmp.lt.s32.totalorder %s3535_s22, %s3535_s22 }
  0x1f   : > { %p3538_p13 = pnand %p3536_p12, %p3907_p7  ;;  %p3545_p6 = por %p3544_p4, %p3543_p2 }
  0x21   : > { %p3539_p0 = pneg %p3538_p13 }
  0x23   : > { %p3546_p8 = pnand %p3545_p6, %p3539_p0 }
  0x25   : > { %3549 = shalt.err (!%p3546_p8)
}
  0x26   : > { %s4890_s23 = smov 64   ;;  %s3804_s28 = smov 4  }
  0x27   : > { %3409 = dma.hbm_to_vmem [thread:$0]  (!%p3891_p5), %s4881_s1, 512, %s3881_s29, [#allocation7], %s4890_s23, %s4890_s23, %s3804_s28  }
  0x28   : > { %s3550_s16 = scalar_lea.hbm %s4883_s3, 1152 }
  0x29   : > { %p3551_p9 = scmp.ne.s32.totalorder %s4883_s3, %s3550_s16  ;;  %p3557_p12 = scmp.lt.u32.totalorder %s3550_s16, %s4883_s3 }
  0x2b   : > { %p3553_p10 = pnand %p3551_p9, %p3907_p7 }
  0x2d   : > { %p3554_p11 = pneg %p3553_p10 }
  0x2f   : > { %p3559_p13 = pnand %p3557_p12, %p3554_p11 }
  0x31   : > { %3562 = shalt.err (!%p3559_p13)
}
  0x32   : > { %s3563_s29 = scalar_lea.vmem %s3895_s10, 1152  ;;  %p3571_p6 = scmp.lt.s32.totalorder %s3895_s10, %s3895_s10 }
  0x33   : > { %p3564_p0 = scmp.ne.s32.totalorder %s3895_s10, %s3563_s29  ;;  %p3572_p8 = scmp.lt.s32.totalorder %s3563_s29, %s3563_s29 }
  0x35   : > { %p3566_p2 = pnand %p3564_p0, %p3907_p7  ;;  %p3573_p9 = por %p3572_p8, %p3571_p6 }
  0x37   : > { %p3567_p4 = pneg %p3566_p2 }
  0x39   : > { %p3574_p10 = pnand %p3573_p9, %p3567_p4 }
  0x3b   : > { %3577 = shalt.err (!%p3574_p10)
}
  0x3c   : > { %3415 = dma.hbm_to_vmem [thread:$0]  (!%p3891_p5), %s4883_s3, 1152, %s3895_s10, [#allocation10], %s4890_s23, %s4890_s23, %s3804_s28  }
  0x3d   : > { %s3578_s15 = scalar_lea.hbm %s4885_s5, 128 }
  0x3e   : > { %p3579_p11 = scmp.ne.s32.totalorder %s4885_s5, %s3578_s15  ;;  %p3585_p0 = scmp.lt.u32.totalorder %s3578_s15, %s4885_s5 }
  0x40   : > { %p3581_p12 = pnand %p3579_p11, %p3907_p7 }
  0x42   : > { %p3582_p13 = pneg %p3581_p12 }
  0x44   : > { %p3587_p2 = pnand %p3585_p0, %p3582_p13 }
  0x46   : > { %3590 = shalt.err (!%p3587_p2)
}
  0x47   : > { %s3591_s10 = scalar_lea.vmem %s3897_s13, 128  ;;  %p3599_p9 = scmp.lt.s32.totalorder %s3897_s13, %s3897_s13 }
  0x48   : > { %p3592_p4 = scmp.ne.s32.totalorder %s3897_s13, %s3591_s10  ;;  %p3600_p10 = scmp.lt.s32.totalorder %s3591_s10, %s3591_s10 }
  0x4a   : > { %p3594_p6 = pnand %p3592_p4, %p3907_p7  ;;  %p3601_p11 = por %p3600_p10, %p3599_p9 }
  0x4c   : > { %p3595_p8 = pneg %p3594_p6 }
  0x4e   : > { %p3602_p12 = pnand %p3601_p11, %p3595_p8 }
  0x50   : > { %3605 = shalt.err (!%p3602_p12)
}
  0x51   : > { %3421 = dma.hbm_to_vmem [thread:$0]  (!%p3891_p5), %s4885_s5, 128, %s3897_s13, [#allocation13], %s4890_s23, %s4890_s23, %s3804_s28  }
  0x52   : > { %s3805_s22 = smov [#allocation8]   ;;  %s3806_s12 = smov [#allocation11]  }
  0x53   : > { %s235_s9 = sshll.u32 %s3805_s22, 4  ;;  %s259_s14 = sshll.u32 %s3806_s12, 4  ;;  %s236_s9 = int_to_ptr.vmem [resolvable:$true] %s235_s9  ;;  %s260_s14 = int_to_ptr.vmem [resolvable:$true] %s259_s14 }
  0x54   : > { %s3606_s17 = scalar_lea.hbm %s4882_s2, 16 }
  0x55   : > { %p3607_p13 = scmp.ne.s32.totalorder %s4882_s2, %s3606_s17  ;;  %p3613_p4 = scmp.lt.u32.totalorder %s3606_s17, %s4882_s2 }
  0x57   : > { %p3609_p0 = pnand %p3607_p13, %p3907_p7 }
  0x59   : > { %p3610_p2 = pneg %p3609_p0 }
  0x5b   : > { %p3615_p6 = pnand %p3613_p4, %p3610_p2 }
  0x5d   : > { %3618 = shalt.err (!%p3615_p6)
}
  0x5e   : > { %s3619_s13 = scalar_lea.vmem %s236_s9, 16  ;;  %s3626_s29 = scalar_lea.vmem %s236_s9, 32 }
  0x5f   : > { %p3620_p8 = scmp.ne.s32.totalorder %s236_s9, %s3619_s13  ;;  %p3627_p11 = scmp.lt.s32.totalorder %s236_s9, %s236_s9 }
  0x60   : > { %p3628_p12 = scmp.lt.s32.totalorder %s3626_s29, %s3619_s13 }
  0x61   : > { %p3622_p9 = pnand %p3620_p8, %p3907_p7 }
  0x62   : > { %p3629_p1 = por %p3628_p12, %p3627_p11 }
  0x63   : > { %p3623_p10 = pneg %p3622_p9 }
  0x65   : > { %p3630_p3 = pnand %p3629_p1, %p3623_p10 }
  0x67   : > { %3633 = shalt.err (!%p3630_p3)
}
  0x68   : > { %3412 = dma.hbm_to_vmem [thread:$0]  (!%p3891_p5), %s4882_s2, 16, %s236_s9, [#allocation7]  }
  0x69   : > { %s3634_s17 = scalar_lea.hbm %s4884_s4, 16 }
  0x6a   : > { %p3635_p13 = scmp.ne.s32.totalorder %s4884_s4, %s3634_s17  ;;  %p3641_p3 = scmp.lt.u32.totalorder %s3634_s17, %s4884_s4 }
  0x6c   : > { %p3637_p0 = pnand %p3635_p13, %p3907_p7 }
  0x6e   : > { %p3638_p1 = pneg %p3637_p0 }
  0x70   : > { %p3643_p2 = pnand %p3641_p3, %p3638_p1 }
  0x72   : > { %3646 = shalt.err (!%p3643_p2)
}
  0x73   : > { %s3647_s13 = scalar_lea.vmem %s260_s14, 16  ;;  %s3654_s9 = scalar_lea.vmem %s260_s14, 32 }
  0x74   : > { %p3648_p4 = scmp.ne.s32.totalorder %s260_s14, %s3647_s13  ;;  %p3655_p9 = scmp.lt.s32.totalorder %s260_s14, %s260_s14 }
  0x75   : > { %p3656_p10 = scmp.lt.s32.totalorder %s3654_s9, %s3647_s13 }
  0x76   : > { %p3650_p6 = pnand %p3648_p4, %p3907_p7 }
  0x77   : > { %p3657_p11 = por %p3656_p10, %p3655_p9 }
  0x78   : > { %p3651_p8 = pneg %p3650_p6 }
  0x7a   : > { %p3658_p12 = pnand %p3657_p11, %p3651_p8 }
  0x7c   : > { %3661 = shalt.err (!%p3658_p12)
}
  0x7d   : > { %3418 = dma.hbm_to_vmem [thread:$0]  (!%p3891_p5), %s4884_s4, 16, %s260_s14, [#allocation10]  }
  0x7e   : > { %s3807_s12 = smov [#allocation14]   ;;  %s3662_s18 = scalar_lea.hbm %s4886_s6, 16 }
  0x7f   : > { %s283_s15 = sshll.u32 %s3807_s12, 4  ;;  %p3663_p13 = scmp.ne.s32.totalorder %s4886_s6, %s3662_s18  ;;  %s284_s15 = int_to_ptr.vmem [resolvable:$true] %s283_s15 }
  0x80   : > { %p3669_p3 = scmp.lt.u32.totalorder %s3662_s18, %s4886_s6 }
  0x81   : > { %p3665_p0 = pnand %p3663_p13, %p3907_p7 }
  0x83   : > { %p3666_p1 = pneg %p3665_p0 }
  0x85   : > { %p3671_p2 = pnand %p3669_p3, %p3666_p1 }
  0x87   : > { %3674 = shalt.err (!%p3671_p2)
}
  0x88   : > { %s3675_s14 = scalar_lea.vmem %s284_s15, 16  ;;  %s3682_s9 = scalar_lea.vmem %s284_s15, 32 }
  0x89   : > { %p3676_p4 = scmp.ne.s32.totalorder %s284_s15, %s3675_s14  ;;  %p3683_p9 = scmp.lt.s32.totalorder %s284_s15, %s284_s15 }
  0x8a   : > { %p3684_p10 = scmp.lt.s32.totalorder %s3682_s9, %s3675_s14 }
  0x8b   : > { %p3678_p6 = pnand %p3676_p4, %p3907_p7 }
  0x8c   : > { %p3685_p11 = por %p3684_p10, %p3683_p9 }
  0x8d   : > { %p3679_p8 = pneg %p3678_p6 }
  0x8f   : > { %p3686_p12 = pnand %p3685_p11, %p3679_p8 }
  0x91   : > { %3689 = shalt.err (!%p3686_p12)
}
  0x92   : > { %3424 = dma.hbm_to_vmem [thread:$0]  (!%p3891_p5), %s4886_s6, 16, %s284_s15, [#allocation13]  }
  0x93   : > { %s2806_s19 = sadd.s32 4294967294, %s3798_s27   ;;  %s4039_s11 = sadd.s32 1, %s3798_s27  }
  0x94   : > { %s30_s12 = ssub.s32 %s3798_s27, %s4039_s11  ;;  %s33_s16 = sadd.s32 1, %s3794_s26 }
  0x95   : > { %p31_p7 = scmp.eq.s32.totalorder %s30_s12, 0  ;;  %p40_p13 = scmp.ne.s32.totalorder %s3794_s26, %s3790_s25 }
  0x96   : > { %p41_p0 = scmp.eq.s32.totalorder %s3798_s27, 0  ;;  %p46_p1 = scmp.ne.s32.totalorder %s3790_s25, %s3786_s24 }
  0x97   : > { %s4050_s17 = scalar_select %p31_p7, %s3794_s26, %s33_s16  }
  0x98   : > { %p4052_p3 = por %p41_p0, %p40_p13  ;;  %p4896_p2 = scmp.eq.s32.totalorder %s3876_s30, 0 }
  0x99   : > { %p196_p4 = scmp.eq.s32.totalorder %s3876_s30, 3  ;;  %p202_p6 = scmp.eq.s32.totalorder %s2806_s19, 3 }
  0x9a   : > { %p4058_p5 = por %p4896_p2, %p46_p1  ;;  %p3439_p8 = scmp.lt.s32.totalorder %s3798_s27, 4 }
  0x9b   : > { %s294_s20 = sand.u32 1, %s3794_s26   ;;  %p4065_p9 = por %p196_p4, %p40_p13 }
  0x9c   : > { %p4069_p10 = por %p202_p6, %p46_p1  ;;  %s2815_s13 = sshll.u32 %s294_s20, 7 }
  0x9d   : > { %s4898_s10 = scalar_select %p4065_p9, 1, 0 }
  0x9e   : > { %s4899_s21 = scalar_select %p4069_p10, 1, 0 }
  0x9f   : > { %s2945_s14 = sshll.u32 %s3798_s27, 11  ;;  %s298_s19 = scalar_lea.vmem [#allocation3], %s2815_s13 }
  0xa0   : > { %s4077_s22 = scalar_lea.hbm %s4880_s0, %s2945_s14  ;;  %s305_s12 = sshll.u32 %s298_s19, 4  ;;  %s4079_s12 = int_to_ptr.vmem [resolvable:$true] %s305_s12 }
  0xa1   : > { %p4083_p11 = pnand %p3439_p8, %p4052_p3  ;;  %s4087_s23 = scalar_lea.sflag [#allocation4], %s294_s20 }
  0xa2   : > { %s3690_s9 = scalar_lea.hbm %s4077_s22, 2048  ;;  %s3695_s18 = scalar_lea.hbm %s4880_s0, 8192 }
  0xa3   : > { %p3691_p12 = scmp.ne.s32.totalorder %s4077_s22, %s3690_s9  ;;  %p3692_p7 = pneg %p4083_p11 }
  0xa4   : > { %p3696_p1 = scmp.lt.u32.totalorder %s4077_s22, %s4880_s0  ;;  %p3697_p3 = scmp.lt.u32.totalorder %s3695_s18, %s3690_s9 }
  0xa5   : > { %p3693_p13 = pnand %p3692_p7, %p3691_p12  ;;  %p3699_p4 = scmp.lt.u32.totalorder %s3690_s9, %s4077_s22 }
  0xa6   : > { %p3698_p2 = por %p3697_p3, %p3696_p1 }
  0xa7   : > { %p3694_p0 = pneg %p3693_p13 }
  0xa8   : > { %p3700_p6 = por %p3699_p4, %p3698_p2 }
  0xaa   : > { %p3701_p8 = pnand %p3700_p6, %p3694_p0 }
  0xac   : > { %3704 = shalt.err (!%p3701_p8)
}
  0xad   : > { %s3705_s20 = scalar_lea.vmem %s4079_s12, 2048  ;;  %s3808_s13 = smov [#allocation3]  }
  0xae   : > { %p3706_p12 = scmp.ne.s32.totalorder %s4079_s12, %s3705_s20  ;;  %s3710_s14 = sshll.u32 %s3808_s13, 4  ;;  %s3711_s14 = int_to_ptr.vmem [resolvable:$false] %s3710_s14 }
  0xaf   : > { %s3712_s29 = scalar_lea.vmem %s3711_s14, 4096  ;;  %p3713_p9 = scmp.lt.s32.totalorder %s4079_s12, %s3711_s14 }
  0xb0   : > { %p3708_p13 = pnand %p3706_p12, %p3692_p7  ;;  %p3714_p1 = scmp.lt.s32.totalorder %s3712_s29, %s3705_s20 }
  0xb2   : > { %p3709_p10 = pneg %p3708_p13  ;;  %p3715_p3 = por %p3714_p1, %p3713_p9 }
  0xb4   : > { %p3716_p2 = pnand %p3715_p3, %p3709_p10 }
  0xb6   : > { %3719 = shalt.err (!%p3716_p2)
}
  0xb7   : > { %s4901_s9 = smov 64   ;;  %p4902_p7 = scmp.ne.s32.totalorder %s4892_s8, 0 }
  0xb8   : > { %3428 = dma.hbm_to_vmem [thread:$0]  (!%p4083_p11), %s4077_s22, 2048, %s4079_s12, %s4087_s23, %s4901_s9, %s4901_s9, %s3804_s28  }
  0xb9   : > { %317 = sbr.rel (%p4902_p7) target bundleno = 1237 (0x4d5), region = 48  ;;  %s4121_s18 = sand.u32 (!%p4902_p7), 1, %s3790_s25  }
  0xba   : > { %s2819_s19 = sshll.u32 (!%p4902_p7), %s4121_s18, 7  ;;  %s320_s20 = scalar_lea.sflag (!%p4902_p7), [#allocation4], %s4121_s18 }
  0xbb   : > { %s4125_s13 = scalar_lea.vmem (!%p4902_p7), [#allocation3], %s2819_s19 }
  0xc0   : > { %3765 = dma.done.wait (%p4058_p5), %s320_s20, 2048  }
  0xc1   : > { %3767 = vsyncadd (%p4058_p5), %s320_s20, 4294965248  ;;  %p4903_p9 = scmp.eq.s32.totalorder %s3876_s30, 0 }
  0xc3   : > { %3769 = dma.done.wait (%p4903_p9), [#allocation7], 528   ;;  %p4904_p10 = pmov %p4903_p9 }
  0xc4   : > { %p4905_p11 = pmov %p4903_p9 }
  0xc5   : > { %3771 = vsyncadd (%p4904_p10), [#allocation7], 4294966768 }
  0xc6   : > { %3773 = dma.done.wait (%p4905_p11), [#allocation10], 1168   ;;  %p4906_p0 = pmov %p4903_p9 }
  0xc8   : > { %3775 = vsyncadd (%p4906_p0), [#allocation10], 4294966128  ;;  %p4907_p4 = pmov %p4906_p0 }
  0xc9   : > { %p4908_p6 = pmov %p4906_p0 }
  0xca   : > { %3777 = dma.done.wait (%p4907_p4), [#allocation13], 144  }
  0xcb   : > { %3779 = vsyncadd (%p4908_p6), [#allocation13], 4294967152  ;;  %v3492_v0 = vld [vmem:[#allocation6] sm:$0xff]   ;;  %v3493_v1 = vld [vmem:[#allocation6 + $0x8] sm:$0xff]   ;;  %vm531_vm0 = vcmask 523264   ;;  %vm933_vm1 = vcmask 1040384  }
  0xcc   : > { %3120 = vmatprep.subr.bf16.mxu0 %v3492_v0  ;;  %v3494_v2 = vld [vmem:[#allocation6 + $0x10] sm:$0xff]   ;;  %v3496_v3 = vld [vmem:[%s4125_s13] sm:$0xff]   ;;  %v3495_v4 = vld [vmem:[#allocation6 + $0x18] sm:$0xff]   ;;  %vm934_vm2 = vsmask.f32 256  ;;  %vm1225_vm3 = vcmask 1046528  }
  0xcd   : > { %3121 = vmatpush3.bf16.msra.mxu0 %v3492_v0  ;;  %3128 = vmatprep.mubr.msk.bf16.mxu0 %vm531_vm0, %v3496_v3  ;;  %v3497_v5 = vld [vmem:[%s4125_s13 + $0x8] sm:$0xff]   ;;  %v3498_v6 = vld [vmem:[%s4125_s13 + $0x10] sm:$0xff]   ;;  %v3499_v7 = vld [vmem:[%s4125_s13 + $0x18] sm:$0xff]   ;;  %vm968_vm5 = vsmask.f32 7424  ;;  %s3809_s8 = smov 32  }
  0xce   : > { %3122 = vmatprep.subr.bf16.mxu0 %v3493_v1  ;;  %v3500_v8 = vld [vmem:[%s4125_s13 + $0x20] sm:$0xff]   ;;  %v3501_v9 = vld [vmem:[%s4125_s13 + $0x28] sm:$0xff]   ;;  %v3502_v10 = vld [vmem:[%s4125_s13 + $0x30] sm:$0xff]   ;;  %s3810_s23 = smov 16   ;;  %vm1388_vm6 = vcmask 392192   ;;  %vm1306_vm7 = vcmask 130048  }
  0xcf   : > { %v3503_v11 = vld [vmem:[%s4125_s13 + $0x38] sm:$0xff]   ;;  %v3504_v12 = vld [vmem:[%s4125_s13 + $0x40] sm:$0xff]   ;;  %v3505_v13 = vld [vmem:[%s4125_s13 + $0x48] sm:$0xff]   ;;  %vm1339_vm8 = vcmask 261120   ;;  %s2826_s28 = sshll.u32 %s4121_s18, 8  ;;  %s2946_s22 = sshll.u32 %s3876_s30, 12 }
  0xd0   : > { %v3506_v14 = vld [vmem:[%s4125_s13 + $0x50] sm:$0xff]   ;;  %v3507_v15 = vld [vmem:[%s4125_s13 + $0x58] sm:$0xff]   ;;  %v3508_v16 = vld [vmem:[%s4125_s13 + $0x60] sm:$0xff]   ;;  %s4724_s15 = scalar_lea.vmem [#allocation15], %s2826_s28  ;;  %s4829_s29 = scalar_lea.hbm %s4887_s7, %s2946_s22 }
  0xd1   : > { %3123 = vmatpush3.bf16.msra.mxu0 %v3493_v1  ;;  %v3509_v17 = vld [vmem:[%s4125_s13 + $0x68] sm:$0xff]   ;;  %v3510_v18 = vld [vmem:[%s4125_s13 + $0x70] sm:$0xff]   ;;  %v3511_v19 = vld [vmem:[%s4125_s13 + $0x78] sm:$0xff]   ;;  %s2676_s12 = sshll.u32 %s4724_s15, 4  ;;  %s2663_s30 = scalar_lea.sflag [#allocation5], %s4121_s18  ;;  %s4831_s12 = int_to_ptr.vmem [resolvable:$true] %s2676_s12 }
  0xd2   : > { %3124 = vmatprep.subr.bf16.mxu0 %v3494_v2  ;;  %v4175_v20 = vld [vmem:[#allocation8] ss:$0 sm:$0xff]  ;;  %vm4215_vm4 = vmand %vm933_vm1, %vm934_vm2  ;;  %s3720_s9 = scalar_lea.vmem %s4831_s12, 4096  ;;  %p4911_p8 = scmp.ne.s32.totalorder %s4898_s10, 0 }
  0xd3   : > { %p3721_p5 = scmp.ne.s32.totalorder %s4831_s12, %s3720_s9  ;;  %s3812_s19 = smov [#allocation15]  }
  0xd4   : > { %s3724_s20 = sshll.u32 %s3812_s19, 4  ;;  %s3725_s20 = int_to_ptr.vmem [resolvable:$false] %s3724_s20 }
  0xd5   : > { %3125 = vmatpush3.bf16.msra.mxu0 %v3494_v2  ;;  %p3722_p12 = pnand %p3721_p5, %p4911_p8  ;;  %p3727_p1 = scmp.lt.s32.totalorder %s4831_s12, %s3725_s20 }
  0xd6   : > { %3126 = vmatprep.subr.bf16.mxu0 %v3495_v4 }
  0xd7   : > { %p3723_p13 = pneg %p3722_p12 }
  0xd9   : > { %3127 = vmatpush3.bf16.msra.mxu0 %v3495_v4 }
  0xdc   : > { %3129 = vmatmul.mubr.msk.bf16.vlgmr.msra.gmra.mrb[0].mxu0 %vm531_vm0, %v3497_v5 }
  0xdd   : > { %3132 = vmatprep.mubr.msk.bf16.mxu0 %vm531_vm0, %v3498_v6 }
  0xe4   : > { %3133 = vmatmul.mubr.msk.bf16.gmra.mrb[4].mxu0 %vm531_vm0, %v3499_v7 }
  0xe5   : > { %3136 = vmatprep.mubr.msk.bf16.mxu0 %vm531_vm0, %v3500_v8 }
  0xec   : > { %3137 = vmatmul.mubr.msk.bf16.gmra.mrb[8].mxu0 %vm531_vm0, %v3501_v9 }
  0xed   : > { %3140 = vmatprep.mubr.msk.bf16.mxu0 %vm531_vm0, %v3502_v10 }
  0xf4   : > { %3141 = vmatmul.mubr.msk.bf16.gmra.mrb[12].mxu0 %vm531_vm0, %v3503_v11 }
  0xf5   : > { %3144 = vmatprep.mubr.msk.bf16.mxu0 %vm531_vm0, %v3504_v12 }
  0xfc   : > { %3145 = vmatmul.mubr.msk.bf16.gmra.mrb[16].mxu0 %vm531_vm0, %v3505_v13 }
  0xfd   : > { %3148 = vmatprep.mubr.msk.bf16.mxu0 %vm531_vm0, %v3506_v14 }
 0x104   : > { %3149 = vmatmul.mubr.msk.bf16.gmra.mrb[20].mxu0 %vm531_vm0, %v3507_v15 }
 0x105   : > { %3152 = vmatprep.mubr.msk.bf16.mxu0 %vm531_vm0, %v3508_v16 }
 0x10c   : > { %3153 = vmatmul.mubr.msk.bf16.gmra.mrb[24].mxu0 %vm531_vm0, %v3509_v17 }
 0x10d   : > { %3156 = vmatprep.mubr.msk.bf16.mxu0 %vm531_vm0, %v3510_v18 }
 0x114   : > { %3157 = vmatmul.mubr.msk.bf16.gmra.mrb[28].mxu0 %vm531_vm0, %v3511_v19 }
 0x1af   : > { %v3130_v21 = vpop.f32.mrb[0].mxu0 }
 0x1b0   : > { %v623_v22 = vadd.f32 %v3130_v21, %v4175_v20  ;;  %v614_v23 = vpop.f32.mrb[1].mxu0 }
 0x1b1   : > { %v615_v24 = vadd.f32 %v4175_v20, %v614_v23  ;;  %v3131_v25 = vpop.f32.mrb[2].mxu0 }
 0x1b2   : > { %v626_v26 = vadd.f32 %v3131_v25, %v4175_v20  ;;  %v617_v27 = vpop.f32.mrb[3].mxu0  ;;  %v743_v29 = vmax.f32 %v623_v22, 0.0 }
 0x1b3   : > { %v618_v28 = vadd.f32 %v4175_v20, %v617_v27  ;;  %v741_v31 = vmax.f32 %v615_v24, 0.0 }
 0x1b4   : > { %v744_v30 = vmax.f32 %v626_v26, 0.0 }
 0x1b5   : > { %v742_v32 = vmax.f32 %v618_v28, 0.0 }
 0x1b6   : > { %v4181_v33 = vpack.c.bf16 %v744_v30, %v743_v29 }
 0x1b7   : > { %v773_v34 = vpack.c.bf16 %v742_v32, %v741_v31  ;;  %v3134_v35 = vpop.f32.mrb[4].mxu0 }
 0x1b8   : > { %v639_v36 = vadd.f32 %v3134_v35, %v4175_v20  ;;  %v630_v37 = vpop.f32.mrb[5].mxu0  ;;  %v797_v22 = vshrl.u32 %v4181_v33, 16  ;;  %v800_v31 = vshll.u32 %v4181_v33, 16 }
 0x1b9   : > { %v631_v38 = vadd.f32 %v4175_v20, %v630_v37  ;;  %v3135_v39 = vpop.f32.mrb[6].mxu0  ;;  %v790_v4 = vshrl.u32 %v773_v34, 16  ;;  %v793_v16 = vshll.u32 %v773_v34, 16 }
 0x1ba   : > { %v642_v40 = vadd.f32 %v3135_v39, %v4175_v20  ;;  %v633_v41 = vpop.f32.mrb[7].mxu0  ;;  %v747_v43 = vmax.f32 %v639_v36, 0.0 }
 0x1bb   : > { %v634_v42 = vadd.f32 %v4175_v20, %v633_v41  ;;  %v745_v45 = vmax.f32 %v631_v38, 0.0  ;;  %v4203_v12 = vrot.slane %v790_v4, 7 }
 0x1bc   : > { %v748_v44 = vmax.f32 %v642_v40, 0.0 }
 0x1bd   : > { %v746_v46 = vmax.f32 %v634_v42, 0.0  ;;  %v795_v26 = vor.u32 %v793_v16, %v4203_v12 }
 0x1be   : > { %v4187_v47 = vpack.c.bf16 %v748_v44, %v747_v43 }
 0x1bf   : > { %v4189_v48 = vpack.c.bf16 %v746_v46, %v745_v45  ;;  %v3138_v49 = vpop.f32.mrb[8].mxu0  ;;  %v4223_v45 = vrot.slane %v797_v22, 7  ;;  %v4227_v46 = vsel %vm4215_vm4, 0, %v795_v26 }
 0x1c0   : > { %v655_v50 = vadd.f32 %v3138_v49, %v4175_v20  ;;  %v646_v51 = vpop.f32.mrb[9].mxu0 }
 0x1c1   : > { %v647_v52 = vadd.f32 %v4175_v20, %v646_v51  ;;  %v3139_v53 = vpop.f32.mrb[10].mxu0  ;;  %v804_v17 = vshrl.u32 %v4189_v48, 16  ;;  %v807_v51 = vshll.u32 %v4189_v48, 16 }
 0x1c2   : > { %v658_v54 = vadd.f32 %v3139_v53, %v4175_v20  ;;  %v649_v55 = vpop.f32.mrb[11].mxu0  ;;  %v751_v57 = vmax.f32 %v655_v50, 0.0 }
 0x1c3   : > { %v650_v56 = vadd.f32 %v4175_v20, %v649_v55  ;;  %v749_v59 = vmax.f32 %v647_v52, 0.0  ;;  %v4219_v37 = vrot.slane %v804_v17, 7 }
 0x1c4   : > { %v752_v58 = vmax.f32 %v658_v54, 0.0 }
 0x1c5   : > { %v750_v60 = vmax.f32 %v650_v56, 0.0  ;;  %v4245_v48 = vor.u32 %v807_v51, %v4219_v37 }
 0x1c6   : > { %v4195_v61 = vpack.c.bf16 %v752_v58, %v751_v57 }
 0x1c7   : > { %v4197_v62 = vpack.c.bf16 %v750_v60, %v749_v59  ;;  %v3142_v63 = vpop.f32.mrb[12].mxu0 }
 0x1c8   : > { %v671_v0 = vadd.f32 %v3142_v63, %v4175_v20  ;;  %v662_v1 = vpop.f32.mrb[13].mxu0  ;;  %v3512_v63 = vld [vmem:[#allocation9 + $0x18] sm:$0xff]  }
 0x1c9   : > { %v663_v2 = vadd.f32 %v4175_v20, %v662_v1  ;;  %v3143_v3 = vpop.f32.mrb[14].mxu0  ;;  %3308 = vmatprep.subr.bf16.mxu1 %v3512_v63  ;;  %3160 = vmatprep.subr.bf16.mxu0 %v3512_v63 }
 0x1ca   : > { %v674_v5 = vadd.f32 %v3143_v3, %v4175_v20  ;;  %v665_v6 = vpop.f32.mrb[15].mxu0  ;;  %v755_v8 = vmax.f32 %v671_v0, 0.0  ;;  %3311 = vmatpush3.bf16.msra.mxu1 %v3512_v63  ;;  %3161 = vmatpush3.bf16.msra.mxu0 %v3512_v63 }
 0x1cb   : > { %v666_v7 = vadd.f32 %v4175_v20, %v665_v6  ;;  %v753_v10 = vmax.f32 %v663_v2, 0.0 }
 0x1cc   : > { %v756_v9 = vmax.f32 %v674_v5, 0.0 }
 0x1cd   : > { %v754_v11 = vmax.f32 %v666_v7, 0.0 }
 0x1ce   : > { %v780_v13 = vpack.c.bf16 %v756_v9, %v755_v8 }
 0x1cf   : > { %v779_v14 = vpack.c.bf16 %v754_v11, %v753_v10  ;;  %v3146_v15 = vpop.f32.mrb[16].mxu0 }
 0x1d0   : > { %v839_v18 = vshrl.u32 %v780_v13, 16  ;;  %v687_v19 = vadd.f32 %v3146_v15, %v4175_v20  ;;  %v678_v21 = vpop.f32.mrb[17].mxu0  ;;  %v842_v28 = vshll.u32 %v780_v13, 16 }
 0x1d1   : > { %v832_v23 = vshrl.u32 %v779_v14, 16  ;;  %v679_v24 = vadd.f32 %v4175_v20, %v678_v21  ;;  %v3147_v25 = vpop.f32.mrb[18].mxu0  ;;  %v835_v34 = vshll.u32 %v779_v14, 16 }
 0x1d2   : > { %v841_v27 = vrot.slane %v839_v18, 7  ;;  %v690_v29 = vadd.f32 %v3147_v25, %v4175_v20  ;;  %v681_v30 = vpop.f32.mrb[19].mxu0  ;;  %v759_v39 = vmax.f32 %v687_v19, 0.0  ;;  %v3513_v18 = vld [vmem:[#allocation9 + $0x20] sm:$0xff]  }
 0x1d3   : > { %v834_v32 = vrot.slane %v832_v23, 7  ;;  %v682_v35 = vadd.f32 %v4175_v20, %v681_v30  ;;  %v757_v42 = vmax.f32 %v679_v24, 0.0  ;;  %3309 = vmatprep.subr.bf16.mxu1 %v3513_v18  ;;  %3162 = vmatprep.subr.bf16.mxu0 %v3513_v18 }
 0x1d4   : > { %v844_v38 = vor.u32 %v842_v28, %v841_v27  ;;  %v760_v40 = vmax.f32 %v690_v29, 0.0  ;;  %v4240_v55 = vsel %vm4215_vm4, %v841_v27, 0  ;;  %3312 = vmatpush3.bf16.msra.mxu1 %v3513_v18  ;;  %3163 = vmatpush3.bf16.msra.mxu0 %v3513_v18 }
 0x1d5   : > { %v837_v41 = vor.u32 %v835_v34, %v834_v32  ;;  %v758_v43 = vmax.f32 %v682_v35, 0.0  ;;  %v958_v44 = vsel %vm4215_vm4, %v834_v32, 0  ;;  %v1248_v8 = vrot.slane %v4240_v55, 1 }
 0x1d6   : > { %v4231_v49 = vsel %vm4215_vm4, 0, %v844_v38  ;;  %v782_v50 = vpack.c.bf16 %v760_v40, %v759_v39  ;;  %v1245_v60 = vrot.slane %v958_v44, 1  ;;  %v1049_v13 = vshll.u32 %v958_v44, 16 }
 0x1d7   : > { %v781_v52 = vpack.c.bf16 %v758_v43, %v757_v42  ;;  %v3150_v53 = vpop.f32.mrb[20].mxu0  ;;  %v4236_v54 = vsel %vm4215_vm4, 0, %v837_v41  ;;  %v1247_v3 = vrot.slane %v4231_v49, 1  ;;  %v1056_v27 = vshll.u32 %v4231_v49, 16 }
 0x1d8   : > { %v853_v56 = vshrl.u32 %v782_v50, 16  ;;  %v703_v57 = vadd.f32 %v3150_v53, %v4175_v20  ;;  %v694_v58 = vpop.f32.mrb[21].mxu0  ;;  %v1244_v59 = vrot.slane %v4236_v54, 1  ;;  %v856_v9 = vshll.u32 %v782_v50, 16 }
 0x1d9   : > { %v846_v0 = vshrl.u32 %v781_v52, 16  ;;  %v695_v1 = vadd.f32 %v4175_v20, %v694_v58  ;;  %v3151_v2 = vpop.f32.mrb[22].mxu0  ;;  %v849_v14 = vshll.u32 %v781_v52, 16  ;;  %v1044_v17 = vshll.u32 %v4236_v54, 16 }
 0x1da   : > { %v855_v4 = vrot.slane %v853_v56, 7  ;;  %v706_v5 = vadd.f32 %v3151_v2, %v4175_v20  ;;  %v697_v6 = vpop.f32.mrb[23].mxu0  ;;  %v1246_v7 = vsel %vm1225_vm3, %v1244_v59, %v1245_v60  ;;  %v763_v15 = vmax.f32 %v703_v57, 0.0 }
 0x1db   : > { %v4252_v10 = vrot.slane %v846_v0, 7  ;;  %v698_v11 = vadd.f32 %v4175_v20, %v697_v6  ;;  %1286 = vrot.lane.b32.xlu1 %v1246_v7, %s3809_s8  ;;  %v761_v19 = vmax.f32 %v695_v1, 0.0  ;;  %v1249_v22 = vsel %vm1225_vm3, %v1247_v3, %v1248_v8  ;;  %v3514_v0 = vld [vmem:[#allocation9 + $0x28] sm:$0xff]  }
 0x1dc   : > { %v764_v16 = vmax.f32 %v706_v5, 0.0  ;;  %v1042_v23 = vshrl.u32 %v4236_v54, 16  ;;  %v858_v24 = vor.u32 %v856_v9, %v855_v4  ;;  %v1046_v26 = vrot.slane %v1044_v17, 1  ;;  %3310 = vmatprep.subr.bf16.mxu1 %v3514_v0  ;;  %3164 = vmatprep.subr.bf16.mxu0 %v3514_v0 }
 0x1dd   : > { %v762_v21 = vmax.f32 %v698_v11, 0.0  ;;  %v851_v28 = vor.u32 %v849_v14, %v4252_v10  ;;  %v1051_v32 = vrot.slane %v1049_v13, 1  ;;  %v1054_v34 = vshrl.u32 %v4231_v49, 16  ;;  %3313 = vmatpush3.bf16.msra.mxu1 %v3514_v0  ;;  %3165 = vmatpush3.bf16.msra.mxu0 %v3514_v0 }
 0x1de   : > { %v784_v25 = vpack.c.bf16 %v764_v16, %v763_v15  ;;  %v1047_v39 = vor.u32 %v1046_v26, %v1042_v23  ;;  %v1061_v41 = vshll.u32 %v4240_v55, 16  ;;  %v4267_v42 = vsel %vm4215_vm4, %v855_v4, 0  ;;  %v4298_v26 = vld [vmem:[#allocation9] sm:$0xff]  }
 0x1df   : > { %v783_v29 = vpack.c.bf16 %v762_v21, %v761_v19  ;;  %v3154_v30 = vpop.f32.mrb[24].mxu0  ;;  %1288 = vrot.lane.b32.xlu1 %v1249_v22, %s3809_s8  ;;  %v1058_v51 = vrot.slane %v1056_v27, 1  ;;  %v4272_v52 = vsel %vm4215_vm4, 0, %v858_v24  ;;  %v4278_v58 = vsel %vm4215_vm4, 0, %v851_v28  ;;  %3198 = vmatprep.subr.bf16.mxu1 %v4298_v26 }
 0x1e0   : > { %v867_v35 = vshrl.u32 %v784_v25, 16  ;;  %v719_v38 = vadd.f32 %v3154_v30, %v4175_v20  ;;  %v710_v40 = vpop.f32.mrb[25].mxu0  ;;  %v1052_v56 = vsel %vm968_vm5, %v1047_v39, %v1051_v32  ;;  %v870_v59 = vshll.u32 %v784_v25, 16 }
 0x1e1   : > { %v860_v43 = vshrl.u32 %v783_v29, 16  ;;  %v711_v44 = vadd.f32 %v4175_v20, %v710_v40  ;;  %v3155_v50 = vpop.f32.mrb[26].mxu0  ;;  %1173 = vrot.lane.b32.xlu0 %v1052_v56, %s3810_s23  ;;  %v1059_v63 = vor.u32 %v1058_v51, %v1054_v34  ;;  %v1063_v4 = vrot.slane %v1061_v41, 1 }
 0x1e2   : > { %v869_v53 = vrot.slane %v867_v35, 7  ;;  %v722_v57 = vadd.f32 %v3155_v50, %v4175_v20  ;;  %v713_v55 = vpop.f32.mrb[27].mxu0  ;;  %v767_v2 = vmax.f32 %v719_v38, 0.0  ;;  %v863_v5 = vshll.u32 %v783_v29, 16 }
 0x1e3   : > { %v714_v60 = vadd.f32 %v4175_v20, %v713_v55  ;;  %v862_v1 = vrot.slane %v860_v43, 7  ;;  %v765_v6 = vmax.f32 %v711_v44, 0.0  ;;  %v1080_v8 = vshll.u32 %v4272_v52, 16 }
 0x1e4   : > { %v768_v3 = vmax.f32 %v722_v57, 0.0  ;;  %v872_v9 = vor.u32 %v870_v59, %v869_v53  ;;  %v1064_v13 = vsel %vm968_vm5, %v1059_v63, %v1063_v4  ;;  %v1085_v14 = vshll.u32 %v4267_v42, 16 }
 0x1e5   : > { %v766_v7 = vmax.f32 %v714_v60, 0.0  ;;  %v960_v15 = vsel %vm4215_vm4, %v4252_v10, 0  ;;  %1175 = vrot.lane.b32.xlu0 %v1064_v13, %s3810_s23  ;;  %v1078_v17 = vshrl.u32 %v4272_v52, 16  ;;  %v1082_v18 = vrot.slane %v1080_v8, 1 }
 0x1e6   : > { %v786_v11 = vpack.c.bf16 %v768_v3, %v767_v2  ;;  %v4292_v21 = vsel %vm4215_vm4, %v869_v53, 0  ;;  %v865_v22 = vor.u32 %v863_v5, %v862_v1  ;;  %v4296_v23 = vsel %vm4215_vm4, %v862_v1, 0 }
 0x1e7   : > { %v785_v16 = vpack.c.bf16 %v766_v7, %v765_v6  ;;  %v3158_v19 = vpop.f32.mrb[28].mxu0  ;;  %v1083_v10 = vor.u32 %v1082_v18, %v1078_v17  ;;  %v1087_v27 = vrot.slane %v1085_v14, 1  ;;  %v1068_v29 = vshll.u32 %v4278_v58, 16 }
 0x1e8   : > { %v881_v24 = vshrl.u32 %v786_v11, 16  ;;  %v726_v25 = vpop.f32.mrb[29].mxu0  ;;  %v735_v28 = vadd.f32 %v3158_v19, %v4175_v20  ;;  %v4304_v32 = vsel %vm4215_vm4, 0, %v872_v9  ;;  %v1066_v35 = vshrl.u32 %v4278_v58, 16 }
 0x1e9   : > { %v3159_v30 = vpop.f32.mrb[30].mxu0  ;;  %v874_v34 = vshrl.u32 %v785_v16, 16  ;;  %v1073_v38 = vshll.u32 %v960_v15, 16  ;;  %v1088_v41 = vsel %vm968_vm5, %v1083_v10, %v1087_v27  ;;  %v1070_v43 = vrot.slane %v1068_v29, 1 }
 0x1ea   : > { %v729_v39 = vpop.f32.mrb[31].mxu0  ;;  %v883_v40 = vrot.slane %v881_v24, 7  ;;  %v738_v44 = vadd.f32 %v3159_v30, %v4175_v20  ;;  %v4312_v50 = vsel %vm4215_vm4, 0, %v865_v22  ;;  %v884_v51 = vshll.u32 %v786_v11, 16  ;;  %1179 = vrot.lane.b32.xlu1 %v1088_v41, %s3810_s23 }
 0x1eb   : > { %v877_v53 = vshll.u32 %v785_v16, 16  ;;  %v727_v56 = vadd.f32 %v4175_v20, %v726_v25  ;;  %v771_v57 = vmax.f32 %v735_v28, 0.0  ;;  %v1071_v55 = vor.u32 %v1070_v43, %v1066_v35 }
 0x1ec   : > { %v1075_v59 = vrot.slane %v1073_v38, 1  ;;  %v772_v60 = vmax.f32 %v738_v44, 0.0  ;;  %v876_v63 = vrot.slane %v874_v34, 7  ;;  %v730_v0 = vadd.f32 %v4175_v20, %v729_v39 }
 0x1ed   : > { %v1253_v1 = vrot.slane %v4272_v52, 1  ;;  %v1254_v2 = vrot.slane %v4267_v42, 1  ;;  %v886_v3 = vor.u32 %v884_v51, %v883_v40  ;;  %v1250_v6 = vrot.slane %v4278_v58, 1 }
 0x1ee   : > { %v1076_v4 = vsel %vm968_vm5, %v1071_v55, %v1075_v59  ;;  %v788_v5 = vpack.c.bf16 %v772_v60, %v771_v57  ;;  %v4323_v7 = vsel %vm4215_vm4, %v883_v40, 0  ;;  %v769_v8 = vmax.f32 %v727_v56, 0.0 }
 0x1ef   : > { %1177 = vrot.lane.b32.xlu0 %v1076_v4, %s3810_s23  ;;  %v770_v9 = vmax.f32 %v730_v0, 0.0  ;;  %v1255_v20 = vsel %vm1225_vm3, %v1253_v1, %v1254_v2  ;;  %v1251_v42 = vrot.slane %v960_v15, 1  ;;  %v1104_v13 = vshll.u32 %v4304_v32, 16 }
 0x1f0   : > { %v895_v11 = vshrl.u32 %v788_v5, 16  ;;  %1292 = vrot.lane.b32.xlu1 %v1255_v20, %s3809_s8  ;;  %v1109_v14 = vshll.u32 %v4292_v21, 16  ;;  %v879_v16 = vor.u32 %v877_v53, %v876_v63  ;;  %v1102_v18 = vshrl.u32 %v4304_v32, 16 }
 0x1f1   : > { %v787_v17 = vpack.c.bf16 %v770_v9, %v769_v8  ;;  %v1092_v19 = vshll.u32 %v4312_v50, 16  ;;  %v1252_v24 = vsel %vm1225_vm3, %v1250_v6, %v1251_v42  ;;  %v1106_v25 = vrot.slane %v1104_v13, 1 }
 0x1f2   : > { %v897_v22 = vrot.slane %v895_v11, 7  ;;  %v1097_v10 = vshll.u32 %v4296_v23, 16  ;;  %v898_v27 = vshll.u32 %v788_v5, 16  ;;  %v1090_v15 = vshrl.u32 %v4312_v50, 16 }
 0x1f3   : > { %v888_v28 = vshrl.u32 %v787_v17, 16  ;;  %1290 = vrot.lane.b32.xlu0 %v1252_v24, %s3809_s8  ;;  %v1094_v29 = vrot.slane %v1092_v19, 1  ;;  %v4338_v30 = vsel %vm4215_vm4, 0, %v886_v3  ;;  %v891_v34 = vshll.u32 %v787_v17, 16 }
 0x1f4   : > { %v1107_v35 = vor.u32 %v1106_v25, %v1102_v18  ;;  %v1111_v38 = vrot.slane %v1109_v14, 1  ;;  %v900_v39 = vor.u32 %v898_v27, %v897_v22  ;;  %v1099_v43 = vrot.slane %v1097_v10, 1 }
 0x1f5   : > { %v890_v40 = vrot.slane %v888_v28, 7  ;;  %v1095_v41 = vor.u32 %v1094_v29, %v1090_v15  ;;  %v4342_v44 = vsel %vm4215_vm4, 0, %v879_v16  ;;  %v964_v51 = vsel %vm4215_vm4, %v876_v63, 0 }
 0x1f6   : > { %v1112_v53 = vsel %vm968_vm5, %v1107_v35, %v1111_v38  ;;  %v1259_v56 = vrot.slane %v4304_v32, 1  ;;  %v818_v57 = vshrl.u32 %v4197_v62, 16  ;;  %v1256_v60 = vrot.slane %v4312_v50, 1 }
 0x1f7   : > { %v893_v55 = vor.u32 %v891_v34, %v890_v40  ;;  %1183 = vrot.lane.b32.xlu1 %v1112_v53, %s3810_s23  ;;  %v1100_v59 = vsel %vm968_vm5, %v1095_v41, %v1099_v43  ;;  %v4354_v0 = vsel %vm4215_vm4, %v897_v22, 0  ;;  %v1260_v63 = vrot.slane %v4292_v21, 1 }
 0x1f8   : > { %1181 = vrot.lane.b32.xlu0 %v1100_v59, %s3810_s23  ;;  %v1128_v1 = vshll.u32 %v4338_v30, 16  ;;  %v1133_v2 = vshll.u32 %v4323_v7, 16  ;;  %v4362_v3 = vsel %vm4215_vm4, 0, %v900_v39  ;;  %v1257_v4 = vrot.slane %v4296_v23, 1 }
 0x1f9   : > { %v1116_v5 = vshll.u32 %v4342_v44, 16  ;;  %v1121_v6 = vshll.u32 %v964_v51, 16  ;;  %v4368_v8 = vsel %vm4215_vm4, 0, %v893_v55  ;;  %v1261_v9 = vsel %vm1225_vm3, %v1259_v56, %v1260_v63 }
 0x1fa   : > { %v1126_v21 = vshrl.u32 %v4338_v30, 16  ;;  %v1130_v20 = vrot.slane %v1128_v1, 1  ;;  %v4374_v11 = vsel %vm4215_vm4, %v890_v40, 0  ;;  %v1258_v23 = vsel %vm1225_vm3, %v1256_v60, %v1257_v4 }
 0x1fb   : > { %1296 = vrot.lane.b32.xlu1 %v1261_v9, %s3809_s8  ;;  %v1114_v42 = vshrl.u32 %v4342_v44, 16  ;;  %v1118_v13 = vrot.slane %v1116_v5, 1  ;;  %v1135_v16 = vrot.slane %v1133_v2, 1  ;;  %v1265_v17 = vrot.slane %v4338_v30, 1 }
 0x1fc   : > { %1294 = vrot.lane.b32.xlu0 %v1258_v23, %s3809_s8  ;;  %v1131_v14 = vor.u32 %v1130_v20, %v1126_v21  ;;  %v1152_v18 = vshll.u32 %v4362_v3, 16  ;;  %v1123_v22 = vrot.slane %v1121_v6, 1  ;;  %v1262_v24 = vrot.slane %v4342_v44, 1 }
 0x1fd   : > { %v1119_v19 = vor.u32 %v1118_v13, %v1114_v42  ;;  %v1140_v25 = vshll.u32 %v4368_v8, 16  ;;  %v1150_v27 = vshrl.u32 %v4362_v3, 16  ;;  %v1157_v15 = vshll.u32 %v4354_v0, 16 }
 0x1fe   : > { %v1136_v10 = vsel %vm968_vm5, %v1131_v14, %v1135_v16  ;;  %v1154_v28 = vrot.slane %v1152_v18, 1  ;;  %v1138_v34 = vshrl.u32 %v4368_v8, 16  ;;  %v1145_v38 = vshll.u32 %v4374_v11, 16 }
 0x1ff   : > { %1187 = vrot.lane.b32.xlu1 %v1136_v10, %s3810_s23  ;;  %v1124_v29 = vsel %vm968_vm5, %v1119_v19, %v1123_v22  ;;  %v1142_v35 = vrot.slane %v1140_v25, 1  ;;  %v802_v39 = vor.u32 %v800_v31, %v4223_v45  ;;  %v811_v40 = vshrl.u32 %v4187_v47, 16 }
 0x200   : > { %1185 = vrot.lane.b32.xlu0 %v1124_v29, %s3810_s23  ;;  %v1266_v41 = vrot.slane %v4323_v7, 1  ;;  %v1155_v43 = vor.u32 %v1154_v28, %v1150_v27  ;;  %v1263_v53 = vrot.slane %v964_v51, 1  ;;  %v1159_v59 = vrot.slane %v1157_v15, 1 }
 0x201   : > { %v1143_v56 = vor.u32 %v1142_v35, %v1138_v34  ;;  %v972_v60 = vshll.u32 %v4227_v46, 16  ;;  %v4402_v63 = vsel %vm4215_vm4, 0, %v4245_v48  ;;  %v820_v33 = vrot.slane %v818_v57, 7 }
 0x202   : > { %v1267_v55 = vsel %vm1225_vm3, %v1265_v17, %v1266_v41  ;;  %v1264_v31 = vsel %vm1225_vm3, %v1262_v24, %v1263_v53  ;;  %v1147_v1 = vrot.slane %v1145_v38, 1  ;;  %v4408_v7 = vsel %vm4215_vm4, 0, %v802_v39 }
 0x203   : > { %1300 = vrot.lane.b32.xlu1 %v1267_v55, %s3809_s8  ;;  %v813_v51 = vrot.slane %v811_v40, 7  ;;  %v1160_v2 = vsel %vm968_vm5, %v1155_v43, %v1159_v59  ;;  %v952_v48 = vsel %vm4215_vm4, %v4203_v12, 0  ;;  %v821_v57 = vshll.u32 %v4197_v62, 16 }
 0x204   : > { %1298 = vrot.lane.b32.xlu0 %v1264_v31, %s3809_s8  ;;  %v1148_v4 = vsel %vm968_vm5, %v1143_v56, %v1147_v1  ;;  %v814_v5 = vshll.u32 %v4187_v47, 16  ;;  %v1271_v6 = vrot.slane %v4362_v3, 1  ;;  %v974_v9 = vrot.slane %v972_v60, 1 }
 0x205   : > { %v996_v21 = vshll.u32 %v4402_v63, 16  ;;  %v823_v20 = vor.u32 %v821_v57, %v820_v33  ;;  %v1268_v23 = vrot.slane %v4368_v8, 1  ;;  %v977_v42 = vshll.u32 %v952_v48, 16 }
 0x206   : > { %v984_v13 = vshll.u32 %v4408_v7, 16  ;;  %v816_v12 = vor.u32 %v814_v5, %v813_v51  ;;  %v825_v62 = vshrl.u32 %v4195_v61, 16  ;;  %v1272_v47 = vrot.slane %v4354_v0, 1 }
 0x207   : > { %1191 = vrot.lane.b32.xlu1 %v1160_v2, %s3810_s23  ;;  %v970_v14 = vshrl.u32 %v4227_v46, 16  ;;  %v953_v16 = vsel %vm4215_vm4, %v4223_v45, 0  ;;  %v954_v17 = vsel %vm4215_vm4, %v4219_v37, 0  ;;  %v1269_v18 = vrot.slane %v4374_v11, 1 }
 0x208   : > { %1189 = vrot.lane.b32.xlu0 %v1148_v4, %s3810_s23  ;;  %v1226_v19 = vrot.slane %v4227_v46, 1  ;;  %v1273_v22 = vsel %vm1225_vm3, %v1271_v6, %v1272_v47  ;;  %v1227_v24 = vrot.slane %v952_v48, 1  ;;  %v998_v10 = vrot.slane %v996_v21, 1 }
 0x209   : > { %v975_v25 = vor.u32 %v974_v9, %v970_v14  ;;  %v4438_v0 = vsel %vm4215_vm4, 0, %v823_v20  ;;  %v1270_v45 = vsel %vm1225_vm3, %v1268_v23, %v1269_v18  ;;  %v979_v27 = vrot.slane %v977_v42, 1 }
 0x20a   : > { %v986_v28 = vrot.slane %v984_v13, 1  ;;  %v4444_v37 = vsel %vm4215_vm4, 0, %v816_v12  ;;  %v827_v11 = vrot.slane %v825_v62, 7  ;;  %v994_v15 = vshrl.u32 %v4402_v63, 16 }
 0x20b   : > { %1304 = vrot.lane.b32.xlu1 %v1273_v22, %s3809_s8  ;;  %v1001_v29 = vshll.u32 %v954_v17, 16  ;;  %v1228_v34 = vsel %vm1225_vm3, %v1226_v19, %v1227_v24  ;;  %v982_v35 = vshrl.u32 %v4408_v7, 16  ;;  %v989_v38 = vshll.u32 %v953_v16, 16 }
 0x20c   : > { %1302 = vrot.lane.b32.xlu0 %v1270_v45, %s3809_s8  ;;  %v828_v39 = vshll.u32 %v4195_v61, 16  ;;  %v980_v40 = vsel %vm968_vm5, %v975_v25, %v979_v27  ;;  %v999_v41 = vor.u32 %v998_v10, %v994_v15  ;;  %v1020_v43 = vshll.u32 %v4438_v0, 16 }
 0x20d   : > { %v987_v53 = vor.u32 %v986_v28, %v982_v35  ;;  %v1008_v56 = vshll.u32 %v4444_v37, 16  ;;  %v1003_v59 = vrot.slane %v1001_v29, 1  ;;  %v3811_v60 = vmov 0  }
 0x20e   : > { %v830_v55 = vor.u32 %v828_v39, %v827_v11  ;;  %1389 = vst.msk [vmem:[#allocation2] sm:$0xff] %vm1388_vm6, %v3811_v60  ;;  %1391 = vst.msk [vmem:[#allocation2 + $0x88] sm:$0xff] %vm1388_vm6, %v3811_v60  ;;  %v956_v61 = vsel %vm4215_vm4, %v820_v33, 0  ;;  %v991_v31 = vrot.slane %v989_v38, 1  ;;  %v955_v1 = vsel %vm4215_vm4, %v813_v51, 0 }
 0x20f   : > { %1274 = vrot.lane.b32.xlu1 %v1228_v34, %s3809_s8  ;;  %v1004_v2 = vsel %vm968_vm5, %v999_v41, %v1003_v59  ;;  %v1232_v48 = vrot.slane %v4402_v63, 1  ;;  %v1022_v57 = vrot.slane %v1020_v43, 1  ;;  %v1229_v5 = vrot.slane %v4408_v7, 1 }
 0x210   : > { %1161 = vrot.lane.b32.xlu0 %v980_v40, %s3810_s23  ;;  %v992_v4 = vsel %vm968_vm5, %v987_v53, %v991_v31  ;;  %v1010_v6 = vrot.slane %v1008_v56, 1  ;;  %v4469_v9 = vsel %vm4215_vm4, 0, %v830_v55  ;;  %v1233_v33 = vrot.slane %v954_v17, 1 }
 0x211   : > { %v1018_v51 = vshrl.u32 %v4438_v0, 16  ;;  %v1025_v21 = vshll.u32 %v956_v61, 16  ;;  %v1230_v20 = vrot.slane %v953_v16, 1  ;;  %v1006_v23 = vshrl.u32 %v4444_v37, 16 }
 0x212   : > { %v1013_v42 = vshll.u32 %v955_v1, 16  ;;  %v1234_v13 = vsel %vm1225_vm3, %v1232_v48, %v1233_v33  ;;  %v1032_v14 = vshll.u32 %v4469_v9, 16  ;;  %v1238_v16 = vrot.slane %v4438_v0, 1  ;;  %v3517_v33 = vld [vmem:[#allocation9 + $0x10] sm:$0xff]  }
 0x213   : > { %1165 = vrot.lane.b32.xlu1 %v1004_v2, %s3810_s23  ;;  %v1023_v12 = vor.u32 %v1022_v57, %v1018_v51  ;;  %v1231_v62 = vsel %vm1225_vm3, %v1229_v5, %v1230_v20  ;;  %v1011_v47 = vor.u32 %v1010_v6, %v1006_v23  ;;  %v1027_v17 = vrot.slane %v1025_v21, 1  ;;  %v3516_v2 = vld [vmem:[#allocation9 + $0x8] sm:$0xff]   ;;  %v4522_v21 = vld [vmem:[#allocation9 + $0x30] sm:$0xff]  }
 0x214   : > { %1163 = vrot.lane.b32.xlu0 %v992_v4, %s3810_s23  ;;  %v1015_v18 = vrot.slane %v1013_v42, 1  ;;  %v957_v22 = vsel %vm4215_vm4, %v827_v11, 0  ;;  %v1235_v25 = vrot.slane %v4444_v37, 1  ;;  %v1034_v10 = vrot.slane %v1032_v14, 1 }
 0x215   : > { %v1028_v19 = vsel %vm968_vm5, %v1023_v12, %v1027_v17  ;;  %v1239_v45 = vrot.slane %v956_v61, 1  ;;  %v1236_v27 = vrot.slane %v955_v1, 1  ;;  %v1030_v28 = vshrl.u32 %v4469_v9, 16 }
 0x216   : > { %v1016_v24 = vsel %vm968_vm5, %v1011_v47, %v1015_v18  ;;  %v1037_v15 = vshll.u32 %v957_v22, 16  ;;  %v1241_v34 = vrot.slane %v4469_v9, 1  ;;  %v1242_v35 = vrot.slane %v957_v22, 1 }
 0x217   : > { %1278 = vrot.lane.b32.xlu1 %v1234_v13, %s3809_s8  ;;  %v1240_v29 = vsel %vm1225_vm3, %v1238_v16, %v1239_v45  ;;  %v1237_v36 = vsel %vm1225_vm3, %v1235_v25, %v1236_v27  ;;  %v1035_v11 = vor.u32 %v1034_v10, %v1030_v28 }
 0x218   : > { %1276 = vrot.lane.b32.xlu0 %v1231_v62, %s3809_s8  ;;  %v1039_v38 = vrot.slane %v1037_v15, 1  ;;  %v1243_v39 = vsel %vm1225_vm3, %v1241_v34, %v1242_v35 }
 0x21a   : > { %v1040_v40 = vsel %vm968_vm5, %v1035_v11, %v1039_v38 }
 0x21b   : > { %1169 = vrot.lane.b32.xlu1 %v1028_v19, %s3810_s23 }
 0x21c   : > { %1167 = vrot.lane.b32.xlu0 %v1016_v24, %s3810_s23 }
 0x21f   : > { %1282 = vrot.lane.b32.xlu1 %v1240_v29, %s3809_s8 }
 0x220   : > { %1280 = vrot.lane.b32.xlu0 %v1237_v36, %s3809_s8 }
 0x223   : > { %1284 = vrot.lane.b32.xlu1 %v1243_v39, %s3809_s8 }
 0x224   : > { %1171 = vrot.lane.b32.xlu0 %v1040_v40, %s3810_s23 }
 0x24d   : > { %v1287_v41 = vpop.permute.xlu1 %1286 }
 0x251   : > { %v1289_v59 = vpop.permute.xlu1 %1288 }
 0x253   : > { %v1174_v43 = vpop.permute.xlu0 %1173 }
 0x254   : > { %v1320_v53 = vsel %vm1306_vm7, %v4236_v54, %v1174_v43 }
 0x255   : > { %v1359_v56 = vsel %vm1339_vm8, %v1320_v53, %v1287_v41  ;;  %v1409_v41 = vld [vmem:[#allocation2] sm:$0xff] }
 0x256   : > { %1399 = vst.msk [vmem:[#allocation2 + $0x38] sm:$0xff] %vm1388_vm6, %v1359_v56 }
 0x257   : > { %v1176_v55 = vpop.permute.xlu0 %1175 }
 0x258   : > { %v1322_v60 = vsel %vm1306_vm7, %v4231_v49, %v1176_v55 }
 0x259   : > { %v1362_v61 = vsel %vm1339_vm8, %v1322_v60, %v1289_v59 }
 0x25a   : > { %1400 = vst.msk [vmem:[#allocation2 + $0x40] sm:$0xff] %vm1388_vm6, %v1362_v61 }
 0x25c   : > { %v1180_v31 = vpop.permute.xlu1 %1179 }
 0x25d   : > { %v4505_v1 = vld [vmem:[#allocation2 + $0x38] sm:$0xff]  ;;  %v1326_v48 = vsel %vm1306_vm7, %v4272_v52, %v1180_v31 }
 0x25e   : > { %3178 = vmatprep.mubr.msk.bf16.mxu1 %vm1388_vm6, %v4505_v1 }
 0x261   : > { %v1178_v54 = vpop.permute.xlu0 %1177  ;;  %v4511_v4 = vld [vmem:[#allocation2 + $0x40] sm:$0xff] }
 0x262   : > { %v1293_v57 = vpop.permute.xlu1 %1292  ;;  %3179 = vmatmul.mubr.msk.bf16.vlgmr.msra.gmra.mrb[0].mxu1 %vm1388_vm6, %v4511_v4  ;;  %v1324_v5 = vsel %vm1306_vm7, %v4278_v58, %v1178_v54  ;;  %v3519_v54 = vld [vmem:[#allocation9 + $0x38] sm:$0xff]  }
 0x263   : > { %v1368_v49 = vsel %vm1339_vm8, %v1326_v48, %v1293_v57  ;;  %3199 = vmatpush3.bf16.msra.mxu1 %v4298_v26 }
 0x264   : > { %1402 = vst.msk [vmem:[#allocation2 + $0x50] sm:$0xff] %vm1388_vm6, %v1368_v49  ;;  %3200 = vmatprep.subr.bf16.mxu1 %v3516_v2 }
 0x265   : > { %v1291_v6 = vpop.permute.xlu0 %1290 }
 0x266   : > { %v1365_v52 = vsel %vm1339_vm8, %v1324_v5, %v1291_v6 }
 0x267   : > { %1401 = vst.msk [vmem:[#allocation2 + $0x48] sm:$0xff] %vm1388_vm6, %v1365_v52  ;;  %3201 = vmatpush3.bf16.msra.mxu1 %v3516_v2 }
 0x268   : > { %3202 = vmatprep.subr.bf16.mxu1 %v3517_v33 }
 0x269   : > { %v1184_v51 = vpop.permute.xlu1 %1183 }
 0x26a   : > { %v1182_v20 = vpop.permute.xlu0 %1181  ;;  %v1330_v26 = vsel %vm1306_vm7, %v4304_v32, %v1184_v51 }
 0x26b   : > { %3203 = vmatpush3.bf16.msra.mxu1 %v3517_v33  ;;  %v1328_v58 = vsel %vm1306_vm7, %v4312_v50, %v1182_v20  ;;  %v4536_v47 = vld [vmem:[#allocation2 + $0x50] sm:$0xff] }
 0x26c   : > { %3236 = vmatprep.subr.bf16.mxu1 %v4522_v21  ;;  %v3520_v33 = vld [vmem:[#allocation9 + $0x40] sm:$0xff]  }
 0x26d   : > { %v1297_v23 = vpop.permute.xlu1 %1296 }
 0x26e   : > { %v1374_v42 = vsel %vm1339_vm8, %v1330_v26, %v1297_v23  ;;  %v1295_v13 = vpop.permute.xlu0 %1294  ;;  %v4530_v12 = vld [vmem:[#allocation2 + $0x48] sm:$0xff] }
 0x26f   : > { %1404 = vst.msk [vmem:[#allocation2 + $0x60] sm:$0xff] %vm1388_vm6, %v1374_v42  ;;  %v1371_v62 = vsel %vm1339_vm8, %v1328_v58, %v1295_v13  ;;  %3182 = vmatprep.mubr.msk.bf16.mxu1 %vm1388_vm6, %v4530_v12 }
 0x270   : > { %1403 = vst.msk [vmem:[#allocation2 + $0x58] sm:$0xff] %vm1388_vm6, %v1371_v62  ;;  %3183 = vmatmul.mubr.msk.bf16.gmra.mrb[4].mxu1 %vm1388_vm6, %v4536_v47 }
 0x271   : > { %v1188_v32 = vpop.permute.xlu1 %1187 }
 0x272   : > { %v1186_v50 = vpop.permute.xlu0 %1185  ;;  %v1334_v14 = vsel %vm1306_vm7, %v4338_v30, %v1188_v32 }
 0x273   : > { %v1332_v18 = vsel %vm1306_vm7, %v4342_v44, %v1186_v50 }
 0x275   : > { %v1301_v17 = vpop.permute.xlu1 %1300 }
 0x276   : > { %v1380_v19 = vsel %vm1339_vm8, %v1334_v14, %v1301_v17  ;;  %v1299_v16 = vpop.permute.xlu0 %1298  ;;  %v4553_v25 = vld [vmem:[#allocation2 + $0x60] sm:$0xff] }
 0x277   : > { %1406 = vst.msk [vmem:[#allocation2 + $0x70] sm:$0xff] %vm1388_vm6, %v1380_v19  ;;  %v1377_v22 = vsel %vm1339_vm8, %v1332_v18, %v1299_v16  ;;  %v4548_v24 = vld [vmem:[#allocation2 + $0x58] sm:$0xff] }
 0x278   : > { %1405 = vst.msk [vmem:[#allocation2 + $0x68] sm:$0xff] %vm1388_vm6, %v1377_v22  ;;  %3186 = vmatprep.mubr.msk.bf16.mxu1 %vm1388_vm6, %v4548_v24  ;;  %v4663_v16 = vld [vmem:[#allocation11] ss:$0 sm:$0xff] }
 0x279   : > { %v1192_v30 = vpop.permute.xlu1 %1191  ;;  %3187 = vmatmul.mubr.msk.bf16.gmra.mrb[8].mxu1 %vm1388_vm6, %v4553_v25 }
 0x27a   : > { %v1190_v44 = vpop.permute.xlu0 %1189  ;;  %v1338_v10 = vsel %vm1306_vm7, %v4362_v3, %v1192_v30 }
 0x27b   : > { %v1336_v27 = vsel %vm1306_vm7, %v4368_v8, %v1190_v44 }
 0x27d   : > { %v1305_v45 = vpop.permute.xlu1 %1304 }
 0x27e   : > { %v1386_v28 = vsel %vm1339_vm8, %v1338_v10, %v1305_v45  ;;  %v1303_v15 = vpop.permute.xlu0 %1302  ;;  %v4569_v36 = vld [vmem:[#allocation2 + $0x70] sm:$0xff] }
 0x27f   : > { %1408 = vst.msk [vmem:[#allocation2 + $0x80] sm:$0xff] %vm1388_vm6, %v1386_v28  ;;  %v1383_v29 = vsel %vm1339_vm8, %v1336_v27, %v1303_v15  ;;  %v4564_v34 = vld [vmem:[#allocation2 + $0x68] sm:$0xff] }
 0x280   : > { %1407 = vst.msk [vmem:[#allocation2 + $0x78] sm:$0xff] %vm1388_vm6, %v1383_v29  ;;  %3190 = vmatprep.mubr.msk.bf16.mxu1 %vm1388_vm6, %v4564_v34 }
 0x281   : > { %3191 = vmatmul.mubr.msk.bf16.gmra.mrb[12].mxu1 %vm1388_vm6, %v4569_v36  ;;  %v1275_v3 = vpop.permute.xlu1 %1274 }
 0x282   : > { %v1162_v8 = vpop.permute.xlu0 %1161 }
 0x283   : > { %v1308_v11 = vsel %vm1306_vm7, %v4227_v46, %v1162_v8 }
 0x284   : > { %v1341_v35 = vsel %vm1339_vm8, %v1308_v11, %v1275_v3 }
 0x285   : > { %1393 = vst.msk [vmem:[#allocation2 + $0x8] sm:$0xff] %vm1388_vm6, %v1341_v35  ;;  %v1166_v38 = vpop.permute.xlu1 %1165 }
 0x286   : > { %v1164_v39 = vpop.permute.xlu0 %1163  ;;  %v4581_v43 = vld [vmem:[#allocation2 + $0x80] sm:$0xff]  ;;  %v1312_v53 = vsel %vm1306_vm7, %v4402_v63, %v1166_v38 }
 0x287   : > { %v4577_v40 = vld [vmem:[#allocation2 + $0x78] sm:$0xff]  ;;  %v1310_v56 = vsel %vm1306_vm7, %v4408_v7, %v1164_v39 }
 0x288   : > { %3194 = vmatprep.mubr.msk.bf16.mxu1 %vm1388_vm6, %v4577_v40 }
 0x289   : > { %3195 = vmatmul.mubr.msk.bf16.gmra.mrb[16].mxu1 %vm1388_vm6, %v4581_v43  ;;  %v1279_v46 = vpop.permute.xlu1 %1278 }
 0x28a   : > { %v1347_v55 = vsel %vm1339_vm8, %v1312_v53, %v1279_v46  ;;  %v1277_v59 = vpop.permute.xlu0 %1276  ;;  %3204 = vmatprep.mubr.msk.bf16.mxu1 %vm1388_vm6, %v1409_v41 }
 0x28b   : > { %1395 = vst.msk [vmem:[#allocation2 + $0x18] sm:$0xff] %vm1388_vm6, %v1347_v55  ;;  %v1344_v60 = vsel %vm1339_vm8, %v1310_v56, %v1277_v59 }
 0x28c   : > { %1394 = vst.msk [vmem:[#allocation2 + $0x10] sm:$0xff] %vm1388_vm6, %v1344_v60  ;;  %v1431_v61 = vld [vmem:[#allocation2 + $0x8] sm:$0xff] }
 0x28d   : > { %v1170_v63 = vpop.permute.xlu1 %1169  ;;  %3166 = vmatprep.mubr.msk.bf16.mxu0 %vm1388_vm6, %v1431_v61 }
 0x28e   : > { %v1168_v31 = vpop.permute.xlu0 %1167  ;;  %v1316_v7 = vsel %vm1306_vm7, %v4438_v0, %v1170_v63 }
 0x28f   : > { %v1314_v48 = vsel %vm1306_vm7, %v4444_v37, %v1168_v31 }
 0x291   : > { %v1283_v2 = vpop.permute.xlu1 %1282  ;;  %3205 = vmatmul.mubr.msk.bf16.vlgmr.msra.gmra.mrb[20].mxu1 %vm1388_vm6, %v1431_v61 }
 0x292   : > { %v1353_v57 = vsel %vm1339_vm8, %v1316_v7, %v1283_v2  ;;  %3237 = vmatpush3.bf16.msra.mxu1 %v4522_v21  ;;  %v1281_v49 = vpop.permute.xlu0 %1280  ;;  %v1433_v0 = vld [vmem:[#allocation2 + $0x18] sm:$0xff] }
 0x293   : > { %1397 = vst.msk [vmem:[#allocation2 + $0x28] sm:$0xff] %vm1388_vm6, %v1353_v57  ;;  %v1350_v5 = vsel %vm1339_vm8, %v1314_v48, %v1281_v49  ;;  %v1432_v6 = vld [vmem:[#allocation2 + $0x10] sm:$0xff]  ;;  %3238 = vmatprep.subr.bf16.mxu1 %v3519_v54 }
 0x294   : > { %1396 = vst.msk [vmem:[#allocation2 + $0x20] sm:$0xff] %vm1388_vm6, %v1350_v5  ;;  %3167 = vmatmul.mubr.msk.bf16.vlgmr.msra.gmra.mrb[32].mxu0 %vm1388_vm6, %v1432_v6  ;;  %3208 = vmatprep.mubr.msk.bf16.mxu1 %vm1388_vm6, %v1432_v6 }
 0x295   : > { %3170 = vmatprep.mubr.msk.bf16.mxu0 %vm1388_vm6, %v1433_v0  ;;  %v1285_v52 = vpop.permute.xlu1 %1284 }
 0x296   : > { %v1172_v37 = vpop.permute.xlu0 %1171  ;;  %3239 = vmatpush3.bf16.msra.mxu1 %v3519_v54 }
 0x297   : > { %v1318_v51 = vsel %vm1306_vm7, %v4469_v9, %v1172_v37  ;;  %3240 = vmatprep.subr.bf16.mxu1 %v3520_v33  ;;  %v3521_v9 = vld [vmem:[#allocation12] sm:$0xff]  }
 0x298   : > { %v1356_v21 = vsel %vm1339_vm8, %v1318_v51, %v1285_v52  ;;  %3274 = vmatprep.subr.bf16.mxu0 %v3521_v9 }
 0x299   : > { %1398 = vst.msk [vmem:[#allocation2 + $0x30] sm:$0xff] %vm1388_vm6, %v1356_v21  ;;  %3209 = vmatmul.mubr.msk.bf16.gmra.mrb[24].mxu1 %vm1388_vm6, %v1433_v0  ;;  %3275 = vmatpush3.bf16.msra.mxu0 %v3521_v9 }
 0x29a   : > { %3241 = vmatpush3.bf16.msra.mxu1 %v3520_v33  ;;  %v1435_v26 = vld [vmem:[#allocation2 + $0x28] sm:$0xff] }
 0x29b   : > { %v1434_v20 = vld [vmem:[#allocation2 + $0x20] sm:$0xff] }
 0x29c   : > { %3171 = vmatmul.mubr.msk.bf16.gmra.mrb[36].mxu0 %vm1388_vm6, %v1434_v20  ;;  %3212 = vmatprep.mubr.msk.bf16.mxu1 %vm1388_vm6, %v1434_v20 }
 0x29d   : > { %3174 = vmatprep.mubr.msk.bf16.mxu0 %vm1388_vm6, %v1435_v26 }
 0x2a0   : > { %v1415_v23 = vld [vmem:[#allocation2 + $0x30] sm:$0xff] }
 0x2a1   : > { %3213 = vmatmul.mubr.msk.bf16.gmra.mrb[28].mxu1 %vm1388_vm6, %v1435_v26 }
 0x2a2   : > { %3216 = vmatprep.mubr.msk.bf16.mxu1 %vm1388_vm6, %v1415_v23 }
 0x2a4   : > { %3175 = vmatmul.mubr.msk.bf16.gmra.mrb[40].mxu0 %vm1388_vm6, %v1415_v23 }
 0x2a9   : > { %3217 = vmatmul.mubr.msk.bf16.gmra.mrb[0].mxu1 %vm1388_vm6, %v4505_v1 }
 0x2aa   : > { %3220 = vmatprep.mubr.msk.bf16.mxu1 %vm1388_vm6, %v4511_v4 }
 0x2b1   : > { %3221 = vmatmul.mubr.msk.bf16.gmra.mrb[4].mxu1 %vm1388_vm6, %v4530_v12 }
 0x2b2   : > { %3224 = vmatprep.mubr.msk.bf16.mxu1 %vm1388_vm6, %v4536_v47 }
 0x2b9   : > { %3225 = vmatmul.mubr.msk.bf16.gmra.mrb[8].mxu1 %vm1388_vm6, %v4548_v24 }
 0x2ba   : > { %3228 = vmatprep.mubr.msk.bf16.mxu1 %vm1388_vm6, %v4553_v25 }
 0x2c1   : > { %3229 = vmatmul.mubr.msk.bf16.gmra.mrb[12].mxu1 %vm1388_vm6, %v4564_v34 }
 0x2c2   : > { %3232 = vmatprep.mubr.msk.bf16.mxu1 %vm1388_vm6, %v4569_v36 }
 0x2c9   : > { %3233 = vmatmul.mubr.msk.bf16.gmra.mrb[16].mxu1 %vm1388_vm6, %v4577_v40 }
 0x2ca   : > { %3242 = vmatprep.mubr.msk.bf16.mxu1 %vm1388_vm6, %v1432_v6 }
 0x2d1   : > { %3243 = vmatmul.mubr.msk.bf16.vlgmr.msra.gmra.mrb[20].mxu1 %vm1388_vm6, %v1433_v0 }
 0x2d2   : > { %3246 = vmatprep.mubr.msk.bf16.mxu1 %vm1388_vm6, %v1434_v20 }
 0x2d9   : > { %3247 = vmatmul.mubr.msk.bf16.gmra.mrb[24].mxu1 %vm1388_vm6, %v1435_v26 }
 0x2da   : > { %3250 = vmatprep.mubr.msk.bf16.mxu1 %vm1388_vm6, %v1415_v23 }
 0x2e1   : > { %3251 = vmatmul.mubr.msk.bf16.gmra.mrb[28].mxu1 %vm1388_vm6, %v4505_v1  ;;  %v1924_v1 = vld [vmem:[#allocation2 + $0x88] sm:$0xff] }
 0x2e2   : > { %3254 = vmatprep.mubr.msk.bf16.mxu1 %vm1388_vm6, %v4511_v4 }
 0x2e9   : > { %3255 = vmatmul.mubr.msk.bf16.gmra.mrb[0].mxu1 %vm1388_vm6, %v4530_v12 }
 0x2ea   : > { %3258 = vmatprep.mubr.msk.bf16.mxu1 %vm1388_vm6, %v4536_v47 }
 0x2f1   : > { %3259 = vmatmul.mubr.msk.bf16.gmra.mrb[4].mxu1 %vm1388_vm6, %v4548_v24 }
 0x2f2   : > { %3262 = vmatprep.mubr.msk.bf16.mxu1 %vm1388_vm6, %v4553_v25 }
 0x2f9   : > { %3263 = vmatmul.mubr.msk.bf16.gmra.mrb[8].mxu1 %vm1388_vm6, %v4564_v34 }
 0x2fa   : > { %3266 = vmatprep.mubr.msk.bf16.mxu1 %vm1388_vm6, %v4569_v36 }
 0x301   : > { %3267 = vmatmul.mubr.msk.bf16.gmra.mrb[12].mxu1 %vm1388_vm6, %v4577_v40 }
 0x302   : > { %3270 = vmatprep.mubr.msk.bf16.mxu1 %vm1388_vm6, %v4581_v43 }
 0x309   : > { %3271 = vmatmul.mubr.msk.bf16.gmra.mrb[16].mxu1 %vm1388_vm6, %v1924_v1 }
 0x367   : > { %v3168_v4 = vpop.f32.mrb[32].mxu0 }
 0x368   : > { %v1554_v58 = vpop.f32.mrb[33].mxu0 }
 0x369   : > { %v3169_v42 = vpop.f32.mrb[34].mxu0 }
 0x36a   : > { %v1557_v13 = vpop.f32.mrb[35].mxu0 }
 0x36f   : > { %v3172_v12 = vpop.f32.mrb[36].mxu0 }
 0x370   : > { %v1570_v62 = vpop.f32.mrb[37].mxu0 }
 0x371   : > { %v3173_v47 = vpop.f32.mrb[38].mxu0 }
 0x372   : > { %v1573_v32 = vpop.f32.mrb[39].mxu0 }
 0x377   : > { %v3176_v50 = vpop.f32.mrb[40].mxu0 }
 0x378   : > { %v1586_v14 = vpop.f32.mrb[41].mxu0 }
 0x379   : > { %v3177_v17 = vpop.f32.mrb[42].mxu0 }
 0x37a   : > { %v1589_v18 = vpop.f32.mrb[43].mxu0 }
 0x3a4   : > { %v3244_v19 = vpop.f32.mrb[20].mxu1 }
 0x3a5   : > { %v3314_v22 = vadd.f32 %v3244_v19, %v3168_v4  ;;  %v2032_v24 = vpop.f32.mrb[21].mxu1 }
 0x3a6   : > { %v3315_v25 = vadd.f32 %v2032_v24, %v1554_v58  ;;  %v3245_v30 = vpop.f32.mrb[22].mxu1 }
 0x3a7   : > { %v2200_v44 = vadd.f32 %v3314_v22, %v4663_v16  ;;  %v3316_v10 = vadd.f32 %v3245_v30, %v3169_v42  ;;  %v2035_v45 = vpop.f32.mrb[23].mxu1 }
 0x3a8   : > { %v2198_v27 = vadd.f32 %v3315_v25, %v4663_v16  ;;  %v3317_v28 = vadd.f32 %v2035_v45, %v1557_v13 }
 0x3a9   : > { %v2201_v15 = vadd.f32 %v3316_v10, %v4663_v16  ;;  %v2232_v34 = vmax.f32 %v2200_v44, 0.0 }
 0x3aa   : > { %v2199_v29 = vadd.f32 %v3317_v28, %v4663_v16  ;;  %v2230_v3 = vmax.f32 %v2198_v27, 0.0 }
 0x3ab   : > { %v2233_v36 = vmax.f32 %v2201_v15, 0.0 }
 0x3ac   : > { %v2231_v8 = vmax.f32 %v2199_v29, 0.0  ;;  %v3248_v11 = vpop.f32.mrb[24].mxu1 }
 0x3ad   : > { %v2263_v35 = vpack.c.bf16 %v2233_v36, %v2232_v34  ;;  %v3318_v38 = vadd.f32 %v3248_v11, %v3172_v12  ;;  %v2048_v39 = vpop.f32.mrb[25].mxu1 }
 0x3ae   : > { %v2262_v40 = vpack.c.bf16 %v2231_v8, %v2230_v3  ;;  %v3319_v41 = vadd.f32 %v2048_v39, %v1570_v62  ;;  %v3249_v43 = vpop.f32.mrb[26].mxu1 }
 0x3af   : > { %v2204_v53 = vadd.f32 %v3318_v38, %v4663_v16  ;;  %v3320_v46 = vadd.f32 %v3249_v43, %v3173_v47  ;;  %v2051_v56 = vpop.f32.mrb[27].mxu1 }
 0x3b0   : > { %v2202_v55 = vadd.f32 %v3319_v41, %v4663_v16  ;;  %v3321_v59 = vadd.f32 %v2051_v56, %v1573_v32  ;;  %3276 = vmatprep.mubr.msk.bf16.mxu0 %vm1306_vm7, %v2262_v40 }
 0x3b1   : > { %v2205_v60 = vadd.f32 %v3320_v46, %v4663_v16  ;;  %3277 = vmatmul.mubr.msk.bf16.vlgmr.msra.gmra.mrb[44].mxu0 %vm1306_vm7, %v2263_v35  ;;  %v2236_v63 = vmax.f32 %v2204_v53, 0.0 }
 0x3b2   : > { %v2203_v61 = vadd.f32 %v3321_v59, %v4663_v16  ;;  %v2234_v54 = vmax.f32 %v2202_v55, 0.0 }
 0x3b3   : > { %v2237_v31 = vmax.f32 %v2205_v60, 0.0 }
 0x3b4   : > { %v2235_v7 = vmax.f32 %v2203_v61, 0.0  ;;  %v3252_v2 = vpop.f32.mrb[28].mxu1 }
 0x3b5   : > { %v2265_v48 = vpack.c.bf16 %v2237_v31, %v2236_v63  ;;  %v3322_v57 = vadd.f32 %v3252_v2, %v3176_v50  ;;  %v2064_v49 = vpop.f32.mrb[29].mxu1 }
 0x3b6   : > { %v2264_v5 = vpack.c.bf16 %v2235_v7, %v2234_v54  ;;  %v3323_v6 = vadd.f32 %v2064_v49, %v1586_v14  ;;  %v3253_v33 = vpop.f32.mrb[30].mxu1 }
 0x3b7   : > { %v2208_v0 = vadd.f32 %v3322_v57, %v4663_v16  ;;  %v3324_v37 = vadd.f32 %v3253_v33, %v3177_v17  ;;  %v2067_v52 = vpop.f32.mrb[31].mxu1 }
 0x3b8   : > { %v2206_v51 = vadd.f32 %v3323_v6, %v4663_v16  ;;  %v3325_v21 = vadd.f32 %v2067_v52, %v1589_v18  ;;  %3280 = vmatprep.mubr.msk.bf16.mxu0 %vm1306_vm7, %v2264_v5 }
 0x3b9   : > { %v2209_v20 = vadd.f32 %v3324_v37, %v4663_v16  ;;  %3281 = vmatmul.mubr.msk.bf16.gmra.mrb[48].mxu0 %vm1306_vm7, %v2265_v48  ;;  %v2240_v23 = vmax.f32 %v2208_v0, 0.0 }
 0x3ba   : > { %v2207_v26 = vadd.f32 %v3325_v21, %v4663_v16  ;;  %v2238_v1 = vmax.f32 %v2206_v51, 0.0 }
 0x3bb   : > { %v2241_v9 = vmax.f32 %v2209_v20, 0.0 }
 0x3bc   : > { %v2239_v4 = vmax.f32 %v2207_v26, 0.0  ;;  %v3256_v58 = vpop.f32.mrb[0].mxu1 }
 0x3bd   : > { %v2267_v42 = vpack.c.bf16 %v2241_v9, %v2240_v23  ;;  %v2212_v13 = vadd.f32 %v3256_v58, %v4663_v16  ;;  %v2080_v12 = vpop.f32.mrb[1].mxu1 }
 0x3be   : > { %v2266_v62 = vpack.c.bf16 %v2239_v4, %v2238_v1  ;;  %v2210_v47 = vadd.f32 %v4663_v16, %v2080_v12  ;;  %v3257_v32 = vpop.f32.mrb[2].mxu1 }
 0x3bf   : > { %v2213_v50 = vadd.f32 %v3257_v32, %v4663_v16  ;;  %v2083_v14 = vpop.f32.mrb[3].mxu1  ;;  %v2244_v18 = vmax.f32 %v2212_v13, 0.0 }
 0x3c0   : > { %v2211_v17 = vadd.f32 %v4663_v16, %v2083_v14  ;;  %3284 = vmatprep.mubr.msk.bf16.mxu0 %vm1306_vm7, %v2266_v62  ;;  %v2242_v22 = vmax.f32 %v2210_v47, 0.0 }
 0x3c1   : > { %v2245_v19 = vmax.f32 %v2213_v50, 0.0  ;;  %3285 = vmatmul.mubr.msk.bf16.gmra.mrb[52].mxu0 %vm1306_vm7, %v2267_v42 }
 0x3c2   : > { %v2243_v24 = vmax.f32 %v2211_v17, 0.0  ;;  %v3011_v17 = vld [vmem:[%s4125_s13 + $0x8] sm:$0xff]  }
 0x3c3   : > { %v2269_v25 = vpack.c.bf16 %v2245_v19, %v2244_v18  ;;  %v2948_v18 = vld [vmem:[%s4125_s13] sm:$0xff]   ;;  %v4715_v19 = vld [vmem:[#allocation14] ss:$0 sm:$0xff] }
 0x3c4   : > { %v2268_v30 = vpack.c.bf16 %v2243_v24, %v2242_v22  ;;  %v3260_v44 = vpop.f32.mrb[4].mxu1  ;;  %v2953_v22 = vunpack.c.l.bf16 %v3011_v17  ;;  %v2949_v24 = vunpack.c.l.bf16 %v2948_v18 }
 0x3c5   : > { %v2216_v10 = vadd.f32 %v3260_v44, %v4663_v16  ;;  %v2096_v45 = vpop.f32.mrb[5].mxu1  ;;  %v2954_v44 = vunpack.c.h.bf16 %v3011_v17  ;;  %v3016_v17 = vld [vmem:[%s4125_s13 + $0x30] sm:$0xff]  }
 0x3c6   : > { %v2214_v27 = vadd.f32 %v4663_v16, %v2096_v45  ;;  %v3261_v28 = vpop.f32.mrb[6].mxu1  ;;  %3288 = vmatprep.mubr.msk.bf16.mxu0 %vm1306_vm7, %v2268_v30 }
 0x3c7   : > { %v2217_v15 = vadd.f32 %v3261_v28, %v4663_v16  ;;  %v2099_v29 = vpop.f32.mrb[7].mxu1  ;;  %v2248_v36 = vmax.f32 %v2216_v10, 0.0 }
 0x3c8   : > { %v2215_v34 = vadd.f32 %v4663_v16, %v2099_v29  ;;  %v2246_v8 = vmax.f32 %v2214_v27, 0.0  ;;  %v2950_v27 = vunpack.c.h.bf16 %v2948_v18 }
 0x3c9   : > { %v2249_v3 = vmax.f32 %v2217_v15, 0.0  ;;  %3289 = vmatmul.mubr.msk.bf16.gmra.mrb[56].mxu0 %vm1306_vm7, %v2269_v25 }
 0x3ca   : > { %v2247_v11 = vmax.f32 %v2215_v34, 0.0 }
 0x3cb   : > { %v2271_v35 = vpack.c.bf16 %v2249_v3, %v2248_v36  ;;  %v3013_v3 = vld [vmem:[%s4125_s13 + $0x18] sm:$0xff]  }
 0x3cc   : > { %v2270_v38 = vpack.c.bf16 %v2247_v11, %v2246_v8  ;;  %v3264_v39 = vpop.f32.mrb[8].mxu1 }
 0x3cd   : > { %v2220_v40 = vadd.f32 %v3264_v39, %v4663_v16  ;;  %v2112_v41 = vpop.f32.mrb[9].mxu1 }
 0x3ce   : > { %v2218_v43 = vadd.f32 %v4663_v16, %v2112_v41  ;;  %v3265_v53 = vpop.f32.mrb[10].mxu1  ;;  %3292 = vmatprep.mubr.msk.bf16.mxu0 %vm1306_vm7, %v2270_v38  ;;  %v2961_v41 = vunpack.c.l.bf16 %v3013_v3 }
 0x3cf   : > { %v2221_v46 = vadd.f32 %v3265_v53, %v4663_v16  ;;  %v2115_v56 = vpop.f32.mrb[11].mxu1  ;;  %v2252_v59 = vmax.f32 %v2220_v40, 0.0 }
 0x3d0   : > { %v2219_v55 = vadd.f32 %v4663_v16, %v2115_v56  ;;  %v2250_v61 = vmax.f32 %v2218_v43, 0.0 }
 0x3d1   : > { %v2253_v60 = vmax.f32 %v2221_v46, 0.0  ;;  %3293 = vmatmul.mubr.msk.bf16.gmra.mrb[60].mxu0 %vm1306_vm7, %v2271_v35  ;;  %v3012_v35 = vld [vmem:[%s4125_s13 + $0x10] sm:$0xff]  }
 0x3d2   : > { %v2251_v63 = vmax.f32 %v2219_v55, 0.0  ;;  %v2957_v46 = vunpack.c.l.bf16 %v3012_v35 }
 0x3d3   : > { %v2273_v31 = vpack.c.bf16 %v2253_v60, %v2252_v59  ;;  %v2962_v59 = vunpack.c.h.bf16 %v3013_v3 }
 0x3d4   : > { %v2272_v54 = vpack.c.bf16 %v2251_v63, %v2250_v61  ;;  %v3268_v7 = vpop.f32.mrb[12].mxu1  ;;  %v2958_v63 = vunpack.c.h.bf16 %v3012_v35  ;;  %v3019_v35 = vld [vmem:[%s4125_s13 + $0x48] sm:$0xff]  }
 0x3d5   : > { %v2224_v2 = vadd.f32 %v3268_v7, %v4663_v16  ;;  %v2128_v48 = vpop.f32.mrb[13].mxu1 }
 0x3d6   : > { %v2222_v57 = vadd.f32 %v4663_v16, %v2128_v48  ;;  %v3269_v49 = vpop.f32.mrb[14].mxu1  ;;  %3296 = vmatprep.mubr.msk.bf16.mxu0 %vm1306_vm7, %v2272_v54 }
 0x3d7   : > { %v2225_v5 = vadd.f32 %v3269_v49, %v4663_v16  ;;  %v2131_v6 = vpop.f32.mrb[15].mxu1  ;;  %v2256_v0 = vmax.f32 %v2224_v2, 0.0 }
 0x3d8   : > { %v2223_v33 = vadd.f32 %v4663_v16, %v2131_v6  ;;  %v2254_v52 = vmax.f32 %v2222_v57, 0.0  ;;  %v3015_v57 = vld [vmem:[%s4125_s13 + $0x28] sm:$0xff]   ;;  %v3014_v6 = vld [vmem:[%s4125_s13 + $0x20] sm:$0xff]  }
 0x3d9   : > { %v2257_v37 = vmax.f32 %v2225_v5, 0.0  ;;  %3297 = vmatmul.mubr.msk.bf16.gmra.mrb[64].mxu0 %vm1306_vm7, %v2273_v31 }
 0x3da   : > { %v2255_v51 = vmax.f32 %v2223_v33, 0.0 }
 0x3db   : > { %v2275_v21 = vpack.c.bf16 %v2257_v37, %v2256_v0 }
 0x3dc   : > { %v2274_v20 = vpack.c.bf16 %v2255_v51, %v2254_v52  ;;  %v3272_v26 = vpop.f32.mrb[16].mxu1  ;;  %v2969_v52 = vunpack.c.l.bf16 %v3015_v57 }
 0x3dd   : > { %v2228_v23 = vadd.f32 %v3272_v26, %v4663_v16  ;;  %v2144_v9 = vpop.f32.mrb[17].mxu1 }
 0x3de   : > { %v2226_v1 = vadd.f32 %v4663_v16, %v2144_v9  ;;  %v3273_v4 = vpop.f32.mrb[18].mxu1  ;;  %3300 = vmatprep.mubr.msk.bf16.mxu0 %vm1306_vm7, %v2274_v20  ;;  %v2965_v20 = vunpack.c.l.bf16 %v3014_v6  ;;  %v2970_v9 = vunpack.c.h.bf16 %v3015_v57 }
 0x3df   : > { %v2229_v58 = vadd.f32 %v3273_v4, %v4663_v16  ;;  %v2147_v42 = vpop.f32.mrb[19].mxu1  ;;  %v2260_v12 = vmax.f32 %v2228_v23, 0.0 }
 0x3e0   : > { %v2227_v13 = vadd.f32 %v4663_v16, %v2147_v42  ;;  %v2258_v47 = vmax.f32 %v2226_v1, 0.0 }
 0x3e1   : > { %v2261_v62 = vmax.f32 %v2229_v58, 0.0  ;;  %3301 = vmatmul.mubr.msk.bf16.gmra.mrb[68].mxu0 %vm1306_vm7, %v2275_v21  ;;  %v2966_v58 = vunpack.c.h.bf16 %v3014_v6  ;;  %v3021_v6 = vld [vmem:[%s4125_s13 + $0x58] sm:$0xff]  }
 0x3e2   : > { %v2259_v32 = vmax.f32 %v2227_v13, 0.0 }
 0x3e3   : > { %v2277_v50 = vpack.c.bf16 %v2261_v62, %v2260_v12 }
 0x3e4   : > { %v2276_v14 = vpack.c.bf16 %v2259_v32, %v2258_v47  ;;  %v3017_v32 = vld [vmem:[%s4125_s13 + $0x38] sm:$0xff]  }
 0x3e6   : > { %3304 = vmatprep.mubr.msk.bf16.mxu0 %vm1306_vm7, %v2276_v14 }
 0x3e9   : > { %3305 = vmatmul.mubr.msk.bf16.gmra.mrb[72].mxu0 %vm1306_vm7, %v2277_v50 }
 0x484   : > { %v3278_v16 = vpop.f32.mrb[44].mxu0 }
 0x485   : > { %v2448_v25 = vadd.f32 %v3278_v16, %v4715_v19  ;;  %v2439_v30 = vpop.f32.mrb[45].mxu0 }
 0x486   : > { %v2440_v10 = vadd.f32 %v4715_v19, %v2439_v30  ;;  %v3279_v45 = vpop.f32.mrb[46].mxu0 }
 0x487   : > { %v2568_v28 = vadd.f32 %v2953_v22, %v2448_v25  ;;  %v2451_v15 = vadd.f32 %v3279_v45, %v4715_v19  ;;  %v2442_v29 = vpop.f32.mrb[47].mxu0 }
 0x488   : > { %v2566_v34 = vadd.f32 %v2949_v24, %v2440_v10  ;;  %v2443_v36 = vadd.f32 %v4715_v19, %v2442_v29  ;;  %v2977_v24 = vunpack.c.l.bf16 %v3017_v32  ;;  %v2974_v29 = vunpack.c.h.bf16 %v3016_v17 }
 0x489   : > { %v2600_v8 = vmax.f32 %v2568_v28, 0.0  ;;  %v2569_v11 = vadd.f32 %v2954_v44, %v2451_v15  ;;  %v2973_v44 = vunpack.c.l.bf16 %v3016_v17  ;;  %v3023_v17 = vld [vmem:[%s4125_s13 + $0x68] sm:$0xff]  }
 0x48a   : > { %v2598_v38 = vmax.f32 %v2566_v34, 0.0  ;;  %v2567_v39 = vadd.f32 %v2950_v27, %v2443_v36  ;;  %v2978_v27 = vunpack.c.h.bf16 %v3017_v32 }
 0x48b   : > { %2632 = vst.msk [vmem:[%s4724_s15 + $0x10] sm:$0xff] %vm531_vm0, %v2600_v8  ;;  %v2601_v40 = vmax.f32 %v2569_v11, 0.0 }
 0x48c   : > { %2630 = vst.msk [vmem:[%s4724_s15] sm:$0xff] %vm531_vm0, %v2598_v38  ;;  %v2599_v43 = vmax.f32 %v2567_v39, 0.0  ;;  %v3282_v53 = vpop.f32.mrb[48].mxu0 }
 0x48d   : > { %2633 = vst.msk [vmem:[%s4724_s15 + $0x18] sm:$0xff] %vm531_vm0, %v2601_v40  ;;  %v2464_v56 = vadd.f32 %v3282_v53, %v4715_v19  ;;  %v2455_v55 = vpop.f32.mrb[49].mxu0  ;;  %v3018_v40 = vld [vmem:[%s4125_s13 + $0x40] sm:$0xff]  }
 0x48e   : > { %2631 = vst.msk [vmem:[%s4724_s15 + $0x8] sm:$0xff] %vm531_vm0, %v2599_v43  ;;  %v2456_v60 = vadd.f32 %v4715_v19, %v2455_v55  ;;  %v3283_v61 = vpop.f32.mrb[50].mxu0 }
 0x48f   : > { %v2572_v31 = vadd.f32 %v2961_v41, %v2464_v56  ;;  %v2467_v54 = vadd.f32 %v3283_v61, %v4715_v19  ;;  %v2458_v7 = vpop.f32.mrb[51].mxu0 }
 0x490   : > { %v2570_v2 = vadd.f32 %v2957_v46, %v2456_v60  ;;  %v2459_v48 = vadd.f32 %v4715_v19, %v2458_v7  ;;  %v2985_v46 = vunpack.c.l.bf16 %v3019_v35  ;;  %v2982_v7 = vunpack.c.h.bf16 %v3018_v40 }
 0x491   : > { %v2604_v49 = vmax.f32 %v2572_v31, 0.0  ;;  %v2573_v5 = vadd.f32 %v2962_v59, %v2467_v54  ;;  %v2981_v59 = vunpack.c.l.bf16 %v3018_v40  ;;  %v3025_v40 = vld [vmem:[%s4125_s13 + $0x78] sm:$0xff]  }
 0x492   : > { %v2602_v33 = vmax.f32 %v2570_v2, 0.0  ;;  %v2571_v0 = vadd.f32 %v2958_v63, %v2459_v48  ;;  %v2986_v63 = vunpack.c.h.bf16 %v3019_v35 }
 0x493   : > { %2636 = vst.msk [vmem:[%s4724_s15 + $0x30] sm:$0xff] %vm531_vm0, %v2604_v49  ;;  %v2605_v37 = vmax.f32 %v2573_v5, 0.0 }
 0x494   : > { %2634 = vst.msk [vmem:[%s4724_s15 + $0x20] sm:$0xff] %vm531_vm0, %v2602_v33  ;;  %v2603_v51 = vmax.f32 %v2571_v0, 0.0  ;;  %v3286_v21 = vpop.f32.mrb[52].mxu0 }
 0x495   : > { %2637 = vst.msk [vmem:[%s4724_s15 + $0x38] sm:$0xff] %vm531_vm0, %v2605_v37  ;;  %v2480_v26 = vadd.f32 %v3286_v21, %v4715_v19  ;;  %v2471_v23 = vpop.f32.mrb[53].mxu0  ;;  %v3020_v37 = vld [vmem:[%s4125_s13 + $0x50] sm:$0xff]  }
 0x496   : > { %2635 = vst.msk [vmem:[%s4724_s15 + $0x28] sm:$0xff] %vm531_vm0, %v2603_v51  ;;  %v2472_v1 = vadd.f32 %v4715_v19, %v2471_v23  ;;  %v3287_v4 = vpop.f32.mrb[54].mxu0 }
 0x497   : > { %v2576_v42 = vadd.f32 %v2969_v52, %v2480_v26  ;;  %v2483_v13 = vadd.f32 %v3287_v4, %v4715_v19  ;;  %v2474_v12 = vpop.f32.mrb[55].mxu0 }
 0x498   : > { %v2574_v62 = vadd.f32 %v2965_v20, %v2472_v1  ;;  %v2475_v47 = vadd.f32 %v4715_v19, %v2474_v12  ;;  %v2993_v20 = vunpack.c.l.bf16 %v3021_v6  ;;  %v2990_v12 = vunpack.c.h.bf16 %v3020_v37 }
 0x499   : > { %v2608_v50 = vmax.f32 %v2576_v42, 0.0  ;;  %v2577_v14 = vadd.f32 %v2970_v9, %v2483_v13  ;;  %v2989_v9 = vunpack.c.l.bf16 %v3020_v37 }
 0x49a   : > { %v2606_v18 = vmax.f32 %v2574_v62, 0.0  ;;  %v2575_v22 = vadd.f32 %v2966_v58, %v2475_v47  ;;  %v2994_v58 = vunpack.c.h.bf16 %v3021_v6 }
 0x49b   : > { %2640 = vst.msk [vmem:[%s4724_s15 + $0x50] sm:$0xff] %vm531_vm0, %v2608_v50  ;;  %v2609_v16 = vmax.f32 %v2577_v14, 0.0 }
 0x49c   : > { %2638 = vst.msk [vmem:[%s4724_s15 + $0x40] sm:$0xff] %vm531_vm0, %v2606_v18  ;;  %v2607_v25 = vmax.f32 %v2575_v22, 0.0  ;;  %v3290_v30 = vpop.f32.mrb[56].mxu0 }
 0x49d   : > { %2641 = vst.msk [vmem:[%s4724_s15 + $0x58] sm:$0xff] %vm531_vm0, %v2609_v16  ;;  %v2496_v10 = vadd.f32 %v3290_v30, %v4715_v19  ;;  %v2487_v45 = vpop.f32.mrb[57].mxu0  ;;  %v3022_v16 = vld [vmem:[%s4125_s13 + $0x60] sm:$0xff]  }
 0x49e   : > { %2639 = vst.msk [vmem:[%s4724_s15 + $0x48] sm:$0xff] %vm531_vm0, %v2607_v25  ;;  %v2488_v28 = vadd.f32 %v4715_v19, %v2487_v45  ;;  %v3291_v15 = vpop.f32.mrb[58].mxu0 }
 0x49f   : > { %v2580_v34 = vadd.f32 %v2977_v24, %v2496_v10  ;;  %v2499_v36 = vadd.f32 %v3291_v15, %v4715_v19  ;;  %v2490_v3 = vpop.f32.mrb[59].mxu0 }
 0x4a0   : > { %v2578_v8 = vadd.f32 %v2973_v44, %v2488_v28  ;;  %v2491_v11 = vadd.f32 %v4715_v19, %v2490_v3  ;;  %v3001_v44 = vunpack.c.l.bf16 %v3023_v17  ;;  %v2998_v3 = vunpack.c.h.bf16 %v3022_v16 }
 0x4a1   : > { %v2612_v38 = vmax.f32 %v2580_v34, 0.0  ;;  %v2581_v39 = vadd.f32 %v2978_v27, %v2499_v36  ;;  %v2997_v27 = vunpack.c.l.bf16 %v3022_v16 }
 0x4a2   : > { %v2610_v41 = vmax.f32 %v2578_v8, 0.0  ;;  %v2579_v43 = vadd.f32 %v2974_v29, %v2491_v11  ;;  %v3002_v29 = vunpack.c.h.bf16 %v3023_v17 }
 0x4a3   : > { %2644 = vst.msk [vmem:[%s4724_s15 + $0x70] sm:$0xff] %vm531_vm0, %v2612_v38  ;;  %v2613_v53 = vmax.f32 %v2581_v39, 0.0 }
 0x4a4   : > { %2642 = vst.msk [vmem:[%s4724_s15 + $0x60] sm:$0xff] %vm531_vm0, %v2610_v41  ;;  %v2611_v56 = vmax.f32 %v2579_v43, 0.0  ;;  %v3294_v55 = vpop.f32.mrb[60].mxu0 }
 0x4a5   : > { %2645 = vst.msk [vmem:[%s4724_s15 + $0x78] sm:$0xff] %vm531_vm0, %v2613_v53  ;;  %v2512_v60 = vadd.f32 %v3294_v55, %v4715_v19  ;;  %v2503_v61 = vpop.f32.mrb[61].mxu0  ;;  %v3024_v53 = vld [vmem:[%s4125_s13 + $0x70] sm:$0xff]   ;;  %s3726_s13 = scalar_lea.vmem %s3725_s20, 8192 }
 0x4a6   : > { %2643 = vst.msk [vmem:[%s4724_s15 + $0x68] sm:$0xff] %vm531_vm0, %v2611_v56  ;;  %v2504_v31 = vadd.f32 %v4715_v19, %v2503_v61  ;;  %v3295_v54 = vpop.f32.mrb[62].mxu0  ;;  %p3728_p3 = scmp.lt.s32.totalorder %s3726_s13, %s3720_s9 }
 0x4a7   : > { %v2584_v2 = vadd.f32 %v2985_v46, %v2512_v60  ;;  %v2515_v48 = vadd.f32 %v3295_v54, %v4715_v19  ;;  %v2506_v57 = vpop.f32.mrb[63].mxu0 }
 0x4a8   : > { %v2582_v49 = vadd.f32 %v2981_v59, %v2504_v31  ;;  %v2507_v5 = vadd.f32 %v4715_v19, %v2506_v57  ;;  %v3009_v59 = vunpack.c.l.bf16 %v3025_v40  ;;  %v3006_v57 = vunpack.c.h.bf16 %v3024_v53  ;;  %p3729_p2 = por %p3728_p3, %p3727_p1 }
 0x4a9   : > { %v2616_v33 = vmax.f32 %v2584_v2, 0.0  ;;  %v2585_v0 = vadd.f32 %v2986_v63, %v2515_v48  ;;  %v3005_v63 = vunpack.c.l.bf16 %v3024_v53 }
 0x4aa   : > { %v2614_v52 = vmax.f32 %v2582_v49, 0.0  ;;  %v2583_v51 = vadd.f32 %v2982_v7, %v2507_v5  ;;  %v3010_v7 = vunpack.c.h.bf16 %v3025_v40  ;;  %p3730_p7 = pnand %p3729_p2, %p3723_p13 }
 0x4ab   : > { %2648 = vst.msk [vmem:[%s4724_s15 + $0x90] sm:$0xff] %vm531_vm0, %v2616_v33  ;;  %v2617_v21 = vmax.f32 %v2585_v0, 0.0 }
 0x4ac   : > { %2646 = vst.msk [vmem:[%s4724_s15 + $0x80] sm:$0xff] %vm531_vm0, %v2614_v52  ;;  %v2615_v26 = vmax.f32 %v2583_v51, 0.0  ;;  %v3298_v23 = vpop.f32.mrb[64].mxu0 }
 0x4ad   : > { %2649 = vst.msk [vmem:[%s4724_s15 + $0x98] sm:$0xff] %vm531_vm0, %v2617_v21  ;;  %v2528_v1 = vadd.f32 %v3298_v23, %v4715_v19  ;;  %v2519_v4 = vpop.f32.mrb[65].mxu0 }
 0x4ae   : > { %2647 = vst.msk [vmem:[%s4724_s15 + $0x88] sm:$0xff] %vm531_vm0, %v2615_v26  ;;  %v2520_v42 = vadd.f32 %v4715_v19, %v2519_v4  ;;  %v3299_v13 = vpop.f32.mrb[66].mxu0 }
 0x4af   : > { %v2588_v62 = vadd.f32 %v2993_v20, %v2528_v1  ;;  %v2531_v47 = vadd.f32 %v3299_v13, %v4715_v19  ;;  %v2522_v32 = vpop.f32.mrb[67].mxu0 }
 0x4b0   : > { %v2586_v50 = vadd.f32 %v2989_v9, %v2520_v42  ;;  %v2523_v14 = vadd.f32 %v4715_v19, %v2522_v32 }
 0x4b1   : > { %v2620_v18 = vmax.f32 %v2588_v62, 0.0  ;;  %v2589_v22 = vadd.f32 %v2994_v58, %v2531_v47 }
 0x4b2   : > { %v2618_v24 = vmax.f32 %v2586_v50, 0.0  ;;  %v2587_v25 = vadd.f32 %v2990_v12, %v2523_v14 }
 0x4b3   : > { %2652 = vst.msk [vmem:[%s4724_s15 + $0xb0] sm:$0xff] %vm531_vm0, %v2620_v18  ;;  %v2621_v30 = vmax.f32 %v2589_v22, 0.0 }
 0x4b4   : > { %2650 = vst.msk [vmem:[%s4724_s15 + $0xa0] sm:$0xff] %vm531_vm0, %v2618_v24  ;;  %v2619_v10 = vmax.f32 %v2587_v25, 0.0  ;;  %v3302_v45 = vpop.f32.mrb[68].mxu0 }
 0x4b5   : > { %2653 = vst.msk [vmem:[%s4724_s15 + $0xb8] sm:$0xff] %vm531_vm0, %v2621_v30  ;;  %v2544_v28 = vadd.f32 %v3302_v45, %v4715_v19  ;;  %v2535_v15 = vpop.f32.mrb[69].mxu0 }
 0x4b6   : > { %2651 = vst.msk [vmem:[%s4724_s15 + $0xa8] sm:$0xff] %vm531_vm0, %v2619_v10  ;;  %v2536_v34 = vadd.f32 %v4715_v19, %v2535_v15  ;;  %v3303_v36 = vpop.f32.mrb[70].mxu0 }
 0x4b7   : > { %v2592_v8 = vadd.f32 %v3001_v44, %v2544_v28  ;;  %v2547_v11 = vadd.f32 %v3303_v36, %v4715_v19  ;;  %v2538_v35 = vpop.f32.mrb[71].mxu0 }
 0x4b8   : > { %v2590_v38 = vadd.f32 %v2997_v27, %v2536_v34  ;;  %v2539_v39 = vadd.f32 %v4715_v19, %v2538_v35 }
 0x4b9   : > { %v2624_v41 = vmax.f32 %v2592_v8, 0.0  ;;  %v2593_v43 = vadd.f32 %v3002_v29, %v2547_v11 }
 0x4ba   : > { %v2622_v46 = vmax.f32 %v2590_v38, 0.0  ;;  %v2591_v56 = vadd.f32 %v2998_v3, %v2539_v39 }
 0x4bb   : > { %2656 = vst.msk [vmem:[%s4724_s15 + $0xd0] sm:$0xff] %vm531_vm0, %v2624_v41  ;;  %v2625_v55 = vmax.f32 %v2593_v43, 0.0 }
 0x4bc   : > { %2654 = vst.msk [vmem:[%s4724_s15 + $0xc0] sm:$0xff] %vm531_vm0, %v2622_v46  ;;  %v2623_v60 = vmax.f32 %v2591_v56, 0.0  ;;  %v3306_v61 = vpop.f32.mrb[72].mxu0 }
 0x4bd   : > { %2657 = vst.msk [vmem:[%s4724_s15 + $0xd8] sm:$0xff] %vm531_vm0, %v2625_v55  ;;  %v2560_v31 = vadd.f32 %v3306_v61, %v4715_v19  ;;  %v2551_v54 = vpop.f32.mrb[73].mxu0 }
 0x4be   : > { %2655 = vst.msk [vmem:[%s4724_s15 + $0xc8] sm:$0xff] %vm531_vm0, %v2623_v60  ;;  %v2552_v2 = vadd.f32 %v4715_v19, %v2551_v54  ;;  %v3307_v48 = vpop.f32.mrb[74].mxu0 }
 0x4bf   : > { %v2596_v49 = vadd.f32 %v3009_v59, %v2560_v31  ;;  %v2563_v5 = vadd.f32 %v3307_v48, %v4715_v19  ;;  %v2554_v6 = vpop.f32.mrb[75].mxu0 }
 0x4c0   : > { %v2594_v33 = vadd.f32 %v3005_v63, %v2552_v2  ;;  %v2555_v0 = vadd.f32 %v4715_v19, %v2554_v6 }
 0x4c1   : > { %v2628_v37 = vmax.f32 %v2596_v49, 0.0  ;;  %v2597_v52 = vadd.f32 %v3010_v7, %v2563_v5 }
 0x4c2   : > { %v2626_v51 = vmax.f32 %v2594_v33, 0.0  ;;  %v2595_v21 = vadd.f32 %v3006_v57, %v2555_v0 }
 0x4c3   : > { %2660 = vst.msk [vmem:[%s4724_s15 + $0xf0] sm:$0xff] %vm531_vm0, %v2628_v37  ;;  %v2629_v20 = vmax.f32 %v2597_v52, 0.0 }
 0x4c4   : > { %2658 = vst.msk [vmem:[%s4724_s15 + $0xe0] sm:$0xff] %vm531_vm0, %v2626_v51  ;;  %v2627_v19 = vmax.f32 %v2595_v21, 0.0 }
 0x4c5   : > { %2661 = vst.msk [vmem:[%s4724_s15 + $0xf8] sm:$0xff] %vm531_vm0, %v2629_v20 }
 0x4c6   : > { %2659 = vst.msk [vmem:[%s4724_s15 + $0xe8] sm:$0xff] %vm531_vm0, %v2627_v19 }
 0x4c7   : > { %3733 = shalt.err (!%p3730_p7)
}
 0x4c8   : > { %s3734_s8 = scalar_lea.hbm %s4829_s29, 4096  ;;  %s3738_s15 = scalar_lea.hbm %s4887_s7, 16384 }
 0x4c9   : > { %p3735_p9 = scmp.ne.s32.totalorder %s4829_s29, %s3734_s8  ;;  %p3739_p0 = scmp.lt.u32.totalorder %s4829_s29, %s4887_s7 }
 0x4ca   : > { %p3740_p4 = scmp.lt.u32.totalorder %s3738_s15, %s3734_s8  ;;  %p3742_p5 = scmp.lt.u32.totalorder %s3734_s8, %s4829_s29 }
 0x4cb   : > { %p3736_p10 = pnand %p3735_p9, %p4911_p8 }
 0x4cc   : > { %p3741_p6 = por %p3740_p4, %p3739_p0 }
 0x4cd   : > { %p3737_p11 = pneg %p3736_p10 }
 0x4ce   : > { %p3743_p12 = por %p3742_p5, %p3741_p6 }
 0x4d0   : > { %p3744_p13 = pnand %p3743_p12, %p3737_p11 }
 0x4d2   : > { %3747 = shalt.err (!%p3744_p13)
}
 0x4d3   : > { %s3813_s14 = smov 128   ;;  %s3814_s9 = smov 8  }
 0x4d4   : > { %3404 = dma.vmem_to_hbm [thread:$0]  (%p4911_p8), %s4831_s12, 4096, %s4829_s29, %s2663_s30, %s3813_s14, %s3813_s14, %s3814_s9  }
 0x4d5 PF: > { %p3446_p1 = scmp.ge.s32.totalorder %s3798_s27, 2  ;;  %s2691_s19 = sand.u32 1, %s3786_s24  }
 0x4d6   : > { %p4912_p3 = scmp.ne.s32.totalorder %s4899_s21, 0  ;;  %s2692_s20 = scalar_lea.sflag [#allocation5], %s2691_s19 }
 0x4d8   : > { %p3430_p2 = pnand %p3446_p1, %p4912_p3 }
 0x4da   : > { %3781 = dma.done.wait (!%p3430_p2), %s2692_s20, 4096  }
 0x4db   : > { %3783 = vsyncadd (!%p3430_p2), %s2692_s20, 4294963200  ;;  %p23_p7 = scmp.ge.s32.totalorder %s4039_s11, 6   ;;  %s4913_s24 = smov %s3790_s25 }
 0x4dc   : > { %s4914_s25 = smov %s3794_s26  ;;  %s4915_s26 = smov %s4050_s17 }
 0x4dd   : > { %s4916_s27 = smov %s4039_s11  ;;  %25 = sbr.rel (!%p23_p7) target bundleno = 8 (0x8), region = 122 }
 0x4e4   :  { %2697 = vsyncpa [#allocation4], 1 }
 0x4e5   :  { %2699 = vsyncpa [#allocation4 + $0x1], 1 }
 0x4e6   :  { %2700 = vsyncpa [#allocation7], 1 }
 0x4e7   :  { %2701 = vsyncpa [#allocation10], 1 }
 0x4e8   :  { %2702 = vsyncpa [#allocation13], 1 }
 0x4e9   :  { %2703 = vsyncpa [#allocation5], 1 }
 0x4ea   :  { %2705 = vsyncpa [#allocation5 + $0x1], 1 }

</bundles_post_ra>
